<compile_context>
chip_gen: v7x
topology: tpu7x:2x2x1
jax: 0.10.0
libtpu: 0.0.40
codegen_flags: <defaults>
</compile_context>

<pallas_src>
import jax
import jax.numpy as jnp
import numpy as np
from jax.experimental import pallas as pl
from jax.experimental.pallas import tpu as pltpu

# ----------------------------- config ---------------------------------------
HIDDEN = 32                 # model hidden_dim
HP = 128                    # lane-padded hidden width used inside the kernel
DEPTH = 2                   # propagation_depth
NUM_PARA = 3
NODES_PER_GRAPH = 16
GRAPHS_PER_TILE = 16
NT = NODES_PER_GRAPH * GRAPHS_PER_TILE          # 256 nodes per tile
NUM_TILES = 2
TOTAL_GRAPHS = NUM_TILES * GRAPHS_PER_TILE      # 32
TOTAL_NODES = NUM_TILES * NT                    # 512
EDGES_PER_GRAPH = 32
N_EDGES = TOTAL_GRAPHS * EDGES_PER_GRAPH
NL = 2 * DEPTH + 3                              # packed linear layers (conv nn x2 per depth + 3 head)
BN_EPS = 1e-5

# OGB-style feature vocab sizes (AtomEncoder: 9 features, BondEncoder: 3)
ATOM_FEATURE_DIMS = [119, 5, 12, 12, 10, 6, 6, 2, 2]
BOND_FEATURE_DIMS = [5, 6, 2]


# ----------------------------- Pallas kernel --------------------------------
def gnn_kernel(x_ref, adj_ref, pool_ref, invc_ref, w_ref, b_ref, out_ref):
    f32, bf16 = jnp.float32, jnp.bfloat16

    x = x_ref[...]            # [NT, HP] bf16 node embeddings (lane-padded)
    adj = adj_ref[...]        # [NT, NT] bf16 dense adjacency, self-loops folded in (GIN eps=0)

    # ---- message passing: GIN conv + folded BatchNorm(eval) + ReLU, DEPTH x ----
    # dropout is identity in eval mode.
    for l in range(DEPTH):
        # GIN: h_i = nn( x_i + sum_{j->i} x_j )  ==  nn( (A + I) x )_i
        h = jnp.dot(adj, x, preferred_element_type=f32)                       # [NT, HP] f32
        # nn = Linear(H,H) -> ReLU -> Linear(H,H); BN folded into 2nd Linear
        h = jnp.dot(h.astype(bf16), w_ref[2 * l], preferred_element_type=f32) + b_ref[2 * l]
        h = jnp.maximum(h, 0.0)
        h = jnp.dot(h.astype(bf16), w_ref[2 * l + 1], preferred_element_type=f32) + b_ref[2 * l + 1]
        x = jnp.maximum(h, 0.0).astype(bf16)

    # ---- global mean pool: exact 0/1 one-hot (bf16 dot) * per-graph 1/count (f32) ----
    pooled = jnp.dot(pool_ref[...].astype(bf16), x,
                     preferred_element_type=f32) * invc_ref[...]              # [GPT, HP] f32

    # ---- MLP head: Linear(+BN folded) -> ReLU -> Linear(+BN folded) -> ReLU -> Linear ----
    m = jnp.dot(pooled.astype(bf16), w_ref[2 * DEPTH + 0], preferred_element_type=f32) + b_ref[2 * DEPTH + 0]
    m = jnp.maximum(m, 0.0)
    m = jnp.dot(m.astype(bf16), w_ref[2 * DEPTH + 1], preferred_element_type=f32) + b_ref[2 * DEPTH + 1]
    m = jnp.maximum(m, 0.0)
    out = jnp.dot(m.astype(bf16), w_ref[2 * DEPTH + 2], preferred_element_type=f32) + b_ref[2 * DEPTH + 2]

    out_ref[...] = out        # [GPT, HP] f32, lane-dense (only first NUM_PARA cols meaningful)


def gnn_forward_pallas(x, adj, pool, invc, w, b):
    """x:[T*NT,HP] bf16, adj:[T*NT,NT] bf16, pool:[T*GPT,NT] f32 (0/1 one-hot),
       invc:[T*GPT,1] f32, w:[NL,HP,HP] bf16, b:[NL,1,HP] f32
       -> [T*GPT, HP] f32 (lane-padded, first NUM_PARA cols meaningful)."""
    return pl.pallas_call(
        gnn_kernel,
        out_shape=jax.ShapeDtypeStruct((TOTAL_GRAPHS, HP), jnp.float32),
        grid_spec=pltpu.PrefetchScalarGridSpec(
            num_scalar_prefetch=0,
            grid=(NUM_TILES,),
            in_specs=[
                pl.BlockSpec((NT, HP), lambda t: (t, 0)),                 # node features tile
                pl.BlockSpec((NT, NT), lambda t: (t, 0)),                 # adjacency tile (+I)
                pl.BlockSpec((GRAPHS_PER_TILE, NT), lambda t: (t, 0)),    # 0/1 one-hot pool tile
                pl.BlockSpec((GRAPHS_PER_TILE, 1), lambda t: (t, 0)),     # per-graph 1/count
                pl.BlockSpec((NL, HP, HP), lambda t: (0, 0, 0)),          # packed weights, VMEM-resident
                pl.BlockSpec((NL, 1, HP), lambda t: (0, 0, 0)),           # packed biases, VMEM-resident
            ],
            out_specs=pl.BlockSpec((GRAPHS_PER_TILE, HP), lambda t: (t, 0)),
        ),
        compiler_params=pltpu.CompilerParams(
            dimension_semantics=("parallel",)),
    )(x, adj, pool, invc, w, b)


# ----------------------------- glue (plain JAX) ------------------------------
def encode_features(feat_int, emb_tables):
    """OGB-style encoder: sum of per-feature embedding lookups."""
    out = jnp.zeros((feat_int.shape[0], HIDDEN), jnp.float32)
    for i, tab in enumerate(emb_tables):
        out = out + tab[feat_int[:, i]]
    return out


def build_tiled_adjacency(edge_index):
    """Per-tile dense adjacency: A[t, dst_local, src_local] += 1 (PyG: row=src, col=dst)."""
    src, dst = edge_index[0], edge_index[1]
    tile = dst // NT
    adj = jnp.zeros((NUM_TILES, NT, NT), jnp.float32)
    return adj.at[tile, dst % NT, src % NT].add(1.0)


def build_tiled_pool(batch):
    """Per-tile 0/1 one-hot pool [T, GPT, NT] and reciprocal node counts [T, GPT, 1]."""
    onehot = (batch[:, None] == jnp.arange(TOTAL_GRAPHS)[None, :]).astype(jnp.float32)  # [N, G]
    counts = jnp.maximum(onehot.sum(axis=0), 1.0)                                        # [G]
    oh = onehot.T.reshape(NUM_TILES, GRAPHS_PER_TILE, NUM_TILES, NT)
    idx = jnp.arange(NUM_TILES)
    oh_tiled = oh[idx, :, idx, :]                                                        # [T, GPT, NT]
    invc = (1.0 / counts).reshape(NUM_TILES, GRAPHS_PER_TILE, 1)                         # [T, GPT, 1]
    return oh_tiled, invc


def fold_batchnorm(key, dim):
    k1, k2, k3, k4 = jax.random.split(key, 4)
    gamma = jax.random.uniform(k1, (dim,), jnp.float32, 0.5, 1.5)
    beta = 0.1 * jax.random.normal(k2, (dim,), jnp.float32)
    mean = 0.1 * jax.random.normal(k3, (dim,), jnp.float32)
    var = jax.random.uniform(k4, (dim,), jnp.float32, 0.5, 1.5)
    scale = gamma / jnp.sqrt(var + BN_EPS)
    shift = beta - mean * scale
    return scale[None, :], shift[None, :]


def linear_init(key, fan_in, fan_out):
    kw, kb = jax.random.split(key)
    w = jax.random.normal(kw, (fan_in, fan_out), jnp.float32) / jnp.sqrt(fan_in)
    b = 0.05 * jax.random.normal(kb, (1, fan_out), jnp.float32)
    return w, b


def init_params(key):
    keys = jax.random.split(key, 32)
    ki = iter(keys)
    cw1, cb1, cw2, cb2, bns, bnb = [], [], [], [], [], []
    for _ in range(DEPTH):
        w1, b1 = linear_init(next(ki), HIDDEN, HIDDEN)
        w2, b2 = linear_init(next(ki), HIDDEN, HIDDEN)
        s, sh = fold_batchnorm(next(ki), HIDDEN)
        cw1.append(w1); cb1.append(b1); cw2.append(w2); cb2.append(b2)
        bns.append(s); bnb.append(sh)
    cw1 = jnp.stack(cw1); cb1 = jnp.stack(cb1)        # [L,H,H], [L,1,H]
    cw2 = jnp.stack(cw2); cb2 = jnp.stack(cb2)
    bns = jnp.stack(bns); bnb = jnp.stack(bnb)        # [L,1,H]
    wm1, bm1 = linear_init(next(ki), HIDDEN, HIDDEN // 2)
    b1s, b1b = fold_batchnorm(next(ki), HIDDEN // 2)
    wm2, bm2 = linear_init(next(ki), HIDDEN // 2, HIDDEN // 4)
    b2s, b2b = fold_batchnorm(next(ki), HIDDEN // 4)
    wm3, bm3 = linear_init(next(ki), HIDDEN // 4, NUM_PARA)
    return (cw1, cb1, cw2, cb2, bns, bnb,
            wm1, bm1, b1s, b1b, wm2, bm2, b2s, b2b, wm3, bm3)


def fold_and_pack_params(raw):
    """Fold eval-mode BatchNorm into the preceding Linear, pad to HP lanes and
    pack everything into one bf16 weight blob + one f32 bias blob."""
    (cw1, cb1, cw2, cb2, bns, bnb,
     wm1, bm1, b1s, b1b, wm2, bm2, b2s, b2b, wm3, bm3) = raw

    def pad_w(w):
        return jnp.zeros((HP, HP), jnp.float32).at[:w.shape[0], :w.shape[1]].set(w)

    def pad_b(b):
        return jnp.zeros((1, HP), jnp.float32).at[:, :b.shape[-1]].set(b.reshape(1, -1))

    ws, bs = [], []
    for l in range(DEPTH):
        ws.append(pad_w(cw1[l]));          bs.append(pad_b(cb1[l]))
        ws.append(pad_w(cw2[l] * bns[l])); bs.append(pad_b(cb2[l] * bns[l] + bnb[l]))
    ws.append(pad_w(wm1 * b1s));           bs.append(pad_b(bm1 * b1s + b1b))
    ws.append(pad_w(wm2 * b2s));           bs.append(pad_b(bm2 * b2s + b2b))
    ws.append(pad_w(wm3));                 bs.append(pad_b(bm3))
    W = jnp.stack(ws).astype(jnp.bfloat16)   # [NL, HP, HP]
    B = jnp.stack(bs)                         # [NL, 1, HP] f32
    return W, B


# ----------------------------- references ------------------------------------
def reference_policy(x_flat, adj_flat, pool_flat, invc_flat, W, B):
    """Same folded params and same bf16-dot / f32-elementwise policy as the kernel."""
    f32, bf16 = jnp.float32, jnp.bfloat16
    xt = x_flat.reshape(NUM_TILES, NT, HP)
    at = adj_flat.reshape(NUM_TILES, NT, NT)
    pt = pool_flat.reshape(NUM_TILES, GRAPHS_PER_TILE, NT)
    it = invc_flat.reshape(NUM_TILES, GRAPHS_PER_TILE, 1)
    outs = []
    for t in range(NUM_TILES):
        x, a = xt[t], at[t]
        for l in range(DEPTH):
            h = jnp.dot(a, x, preferred_element_type=f32)
            h = jnp.dot(h.astype(bf16), W[2 * l], preferred_element_type=f32) + B[2 * l]
            h = jnp.maximum(h, 0.0)
            h = jnp.dot(h.astype(bf16), W[2 * l + 1], preferred_element_type=f32) + B[2 * l + 1]
            x = jnp.maximum(h, 0.0).astype(bf16)
        pooled = jnp.dot(pt[t].astype(bf16), x, preferred_element_type=f32) * it[t]
        m = jnp.maximum(jnp.dot(pooled.astype(bf16), W[2 * DEPTH + 0], preferred_element_type=f32) + B[2 * DEPTH + 0], 0.0)
        m = jnp.maximum(jnp.dot(m.astype(bf16), W[2 * DEPTH + 1], preferred_element_type=f32) + B[2 * DEPTH + 1], 0.0)
        outs.append(jnp.dot(m.astype(bf16), W[2 * DEPTH + 2], preferred_element_type=f32) + B[2 * DEPTH + 2])
    return jnp.concatenate(outs, axis=0)[:, :NUM_PARA]


def reference_f32(x_emb, adj_raw, pool_mean, raw):
    """Pure-f32, unfolded module semantics (GIN eps=0, BN eval, ReLU, mean pool, MLP)."""
    (cw1, cb1, cw2, cb2, bns, bnb,
     wm1, bm1, b1s, b1b, wm2, bm2, b2s, b2b, wm3, bm3) = raw
    xt = x_emb.reshape(NUM_TILES, NT, HIDDEN)
    outs = []
    for t in range(NUM_TILES):
        x = xt[t]
        for l in range(DEPTH):
            h = x + adj_raw[t] @ x
            h = jnp.maximum(h @ cw1[l] + cb1[l], 0.0)
            h = h @ cw2[l] + cb2[l]
            x = jnp.maximum(h * bns[l] + bnb[l], 0.0)
        pooled = pool_mean[t] @ x
        m = jnp.maximum((pooled @ wm1 + bm1) * b1s + b1b, 0.0)
        m = jnp.maximum((m @ wm2 + bm2) * b2s + b2b, 0.0)
        outs.append(m @ wm3 + bm3)
    return jnp.concatenate(outs, axis=0)


# ----------------------------- main ------------------------------------------
if __name__ == "__main__":
    root = jax.random.PRNGKey(0)
    k_atom, k_bond, k_edge, k_emb, k_params = jax.random.split(root, 5)

    # Synthetic batched graph inputs (what GNNePCSAFT.forward receives)
    x_int = jnp.stack(
        [jax.random.randint(jax.random.fold_in(k_atom, i), (TOTAL_NODES,), 0, d)
         for i, d in enumerate(ATOM_FEATURE_DIMS)], axis=1)                       # [N, 9] int
    edge_attr_int = jnp.stack(
        [jax.random.randint(jax.random.fold_in(k_bond, i), (N_EDGES,), 0, d)
         for i, d in enumerate(BOND_FEATURE_DIMS)], axis=1)                       # [E, 3] int
    k_src, k_dst = jax.random.split(k_edge)
    goff = jnp.repeat(jnp.arange(TOTAL_GRAPHS, dtype=jnp.int32) * NODES_PER_GRAPH,
                      EDGES_PER_GRAPH)
    src = jax.random.randint(k_src, (N_EDGES,), 0, NODES_PER_GRAPH) + goff
    dst = jax.random.randint(k_dst, (N_EDGES,), 0, NODES_PER_GRAPH) + goff
    edge_index = jnp.stack([src, dst], axis=0)                                    # [2, E]
    batch = jnp.arange(TOTAL_NODES, dtype=jnp.int32) // NODES_PER_GRAPH           # [N]

    # Embedding tables (AtomEncoder / BondEncoder), deterministic init
    atom_tables = [0.2 * jax.random.normal(jax.random.fold_in(k_emb, i), (d, HIDDEN), jnp.float32)
                   for i, d in enumerate(ATOM_FEATURE_DIMS)]
    bond_tables = [0.2 * jax.random.normal(jax.random.fold_in(k_emb, 100 + i), (d, HIDDEN), jnp.float32)
                   for i, d in enumerate(BOND_FEATURE_DIMS)]

    # Glue: embeddings (gathers), per-tile adjacency, per-tile one-hot pool / counts
    x_emb = encode_features(x_int, atom_tables)                 # node_embed(x)      [N, 32] f32
    edge_emb = encode_features(edge_attr_int, bond_tables)      # edge_embed(edge_attr)
    # GIN conv has no 'edge_attr' in its forward signature, so edge_emb is unused
    # (matches the module's inspect.signature branch for conv='GIN').
    del edge_emb
    adj_raw = build_tiled_adjacency(edge_index)                 # [T, NT, NT] f32 (no self loops)
    pool_oh, invc = build_tiled_pool(batch)                     # [T, GPT, NT] f32, [T, GPT, 1] f32

    raw_params = init_params(k_params)
    W, B = fold_and_pack_params(raw_params)

    # Kernel operands: lane-padded bf16 activations, self-loop-folded bf16 adjacency,
    # 0/1 one-hot pool (f32 in HBM, cast to bf16 in-kernel), per-graph 1/count f32.
    x_pad = (jnp.zeros((TOTAL_NODES, HP), jnp.float32)
             .at[:, :HIDDEN].set(x_emb)).astype(jnp.bfloat16)                     # [N, HP] bf16
    adj_gin = (adj_raw + jnp.eye(NT, dtype=jnp.float32)[None]
               ).reshape(NUM_TILES * NT, NT).astype(jnp.bfloat16)                 # [N, NT] bf16
    pool_flat = pool_oh.reshape(TOTAL_GRAPHS, NT)                                 # [G, NT] f32
    invc_flat = invc.reshape(TOTAL_GRAPHS, 1)                                     # [G, 1]  f32

    out_pad = gnn_forward_pallas(x_pad, adj_gin, pool_flat, invc_flat, W, B)
    out_pad = jax.block_until_ready(out_pad)
    out = np.asarray(out_pad)[:, :NUM_PARA]
    assert out.shape == (TOTAL_GRAPHS, NUM_PARA)

    # Tight check: same folded params / same bf16-dot policy, pure jnp
    ref_p = reference_policy(x_pad, adj_gin, pool_flat, invc_flat, W, B)
    np.testing.assert_allclose(out, np.asarray(ref_p), rtol=2e-3, atol=2e-3)

    # Semantics check: pure-f32 unfolded module forward (tolerance covers bf16 MXU rounding)
    pool_mean = pool_oh * invc                                                    # [T, GPT, NT] mean-pool
    ref_f = reference_f32(x_emb, adj_raw, pool_mean, raw_params)
    np.testing.assert_allclose(out, np.asarray(ref_f), rtol=1e-1, atol=1e-1)

    print("KERNEL_OK")
</pallas_src>

<mosaic_0001>
module attributes {stable_mosaic.version = 11 : i64} {
  func.func @gnn_kernel(%arg0: i32, %arg1: memref<256x128xbf16, #tpu.memory_space<vmem>>, %arg2: memref<256x256xbf16, #tpu.memory_space<vmem>>, %arg3: memref<16x256xf32, #tpu.memory_space<vmem>>, %arg4: memref<16x1xf32, #tpu.memory_space<vmem>>, %arg5: memref<7x128x128xbf16, #tpu.memory_space<vmem>>, %arg6: memref<7x1x128xf32, #tpu.memory_space<vmem>>, %arg7: memref<16x128xf32, #tpu.memory_space<vmem>>) attributes {dimension_semantics = [#tpu.dimension_semantics<parallel>], iteration_bounds = array<i64: 2>, scalar_prefetch = 0 : i64, scratch_operands = 0 : i64, tpu.core_type = #tpu.core_type<tc>, window_params = [{transform_indices = @transform_0, window_bounds = array<i64: 256, 128>}, {transform_indices = @transform_1, window_bounds = array<i64: 256, 256>}, {transform_indices = @transform_2, window_bounds = array<i64: 16, 256>}, {transform_indices = @transform_3, window_bounds = array<i64: 16, 1>}, {pipeline_mode = #tpu.pipeline_mode<synchronous>, transform_indices = @transform_4, window_bounds = array<i64: 7, 128, 128>}, {pipeline_mode = #tpu.pipeline_mode<synchronous>, transform_indices = @transform_5, window_bounds = array<i64: 7, 1, 128>}, {transform_indices = @transform_6, window_bounds = array<i64: 16, 128>}]} {
    %c0 = arith.constant 0 : index
    %c0_0 = arith.constant 0 : index
    %0 = vector.load %arg1[%c0, %c0_0] : memref<256x128xbf16, #tpu.memory_space<vmem>>, vector<256x128xbf16>
    %c0_1 = arith.constant 0 : index
    %c0_2 = arith.constant 0 : index
    %1 = vector.load %arg2[%c0_1, %c0_2] : memref<256x256xbf16, #tpu.memory_space<vmem>>, vector<256x256xbf16>
    %cst = arith.constant dense<0.000000e+00> : vector<256x128xf32>
    %2 = tpu.matmul %1, %0, %cst {dimension_numbers = #tpu.dot_dimension_numbers<[1], [0], [0], [1], [0, 0, 1, 1], [], []>} : vector<256x256xbf16>, vector<256x128xbf16>, vector<256x128xf32> -> vector<256x128xf32>
    %3 = arith.truncf %2 : vector<256x128xf32> to vector<256x128xbf16>
    %c0_3 = arith.constant 0 : index
    %c0_4 = arith.constant 0 : index
    %c0_5 = arith.constant 0 : index
    %4 = vector.load %arg5[%c0_3, %c0_4, %c0_5] : memref<7x128x128xbf16, #tpu.memory_space<vmem>>, vector<1x128x128xbf16>
    %5 = vector.shape_cast %4 : vector<1x128x128xbf16> to vector<128x128xbf16>
    %cst_6 = arith.constant dense<0.000000e+00> : vector<256x128xf32>
    %6 = tpu.matmul %3, %5, %cst_6 {dimension_numbers = #tpu.dot_dimension_numbers<[1], [0], [0], [1], [0, 0, 1, 1], [], []>} : vector<256x128xbf16>, vector<128x128xbf16>, vector<256x128xf32> -> vector<256x128xf32>
    %c0_7 = arith.constant 0 : index
    %c0_8 = arith.constant 0 : index
    %c0_9 = arith.constant 0 : index
    %7 = vector.load %arg6[%c0_7, %c0_8, %c0_9] : memref<7x1x128xf32, #tpu.memory_space<vmem>>, vector<1x1x128xf32>
    %8 = vector.shape_cast %7 : vector<1x1x128xf32> to vector<1x128xf32>
    %9 = vector.broadcast %8 : vector<1x128xf32> to vector<256x128xf32>
    %10 = arith.addf %6, %9 : vector<256x128xf32>
    %cst_10 = arith.constant 0.000000e+00 : f32
    %11 = vector.broadcast %cst_10 : f32 to vector<256x128xf32>
    %12 = arith.maximumf %10, %11 : vector<256x128xf32>
    %13 = arith.truncf %12 : vector<256x128xf32> to vector<256x128xbf16>
    %c1 = arith.constant 1 : index
    %c0_11 = arith.constant 0 : index
    %c0_12 = arith.constant 0 : index
    %14 = vector.load %arg5[%c1, %c0_11, %c0_12] : memref<7x128x128xbf16, #tpu.memory_space<vmem>>, vector<1x128x128xbf16>
    %15 = vector.shape_cast %14 : vector<1x128x128xbf16> to vector<128x128xbf16>
    %cst_13 = arith.constant dense<0.000000e+00> : vector<256x128xf32>
    %16 = tpu.matmul %13, %15, %cst_13 {dimension_numbers = #tpu.dot_dimension_numbers<[1], [0], [0], [1], [0, 0, 1, 1], [], []>} : vector<256x128xbf16>, vector<128x128xbf16>, vector<256x128xf32> -> vector<256x128xf32>
    %c1_14 = arith.constant 1 : index
    %c0_15 = arith.constant 0 : index
    %c0_16 = arith.constant 0 : index
    %17 = vector.load %arg6[%c1_14, %c0_15, %c0_16] : memref<7x1x128xf32, #tpu.memory_space<vmem>>, vector<1x1x128xf32>
    %18 = vector.shape_cast %17 : vector<1x1x128xf32> to vector<1x128xf32>
    %19 = vector.broadcast %18 : vector<1x128xf32> to vector<256x128xf32>
    %20 = arith.addf %16, %19 : vector<256x128xf32>
    %cst_17 = arith.constant 0.000000e+00 : f32
    %21 = vector.broadcast %cst_17 : f32 to vector<256x128xf32>
    %22 = arith.maximumf %20, %21 : vector<256x128xf32>
    %23 = arith.truncf %22 : vector<256x128xf32> to vector<256x128xbf16>
    %cst_18 = arith.constant dense<0.000000e+00> : vector<256x128xf32>
    %24 = tpu.matmul %1, %23, %cst_18 {dimension_numbers = #tpu.dot_dimension_numbers<[1], [0], [0], [1], [0, 0, 1, 1], [], []>} : vector<256x256xbf16>, vector<256x128xbf16>, vector<256x128xf32> -> vector<256x128xf32>
    %25 = arith.truncf %24 : vector<256x128xf32> to vector<256x128xbf16>
    %c2 = arith.constant 2 : index
    %c0_19 = arith.constant 0 : index
    %c0_20 = arith.constant 0 : index
    %26 = vector.load %arg5[%c2, %c0_19, %c0_20] : memref<7x128x128xbf16, #tpu.memory_space<vmem>>, vector<1x128x128xbf16>
    %27 = vector.shape_cast %26 : vector<1x128x128xbf16> to vector<128x128xbf16>
    %cst_21 = arith.constant dense<0.000000e+00> : vector<256x128xf32>
    %28 = tpu.matmul %25, %27, %cst_21 {dimension_numbers = #tpu.dot_dimension_numbers<[1], [0], [0], [1], [0, 0, 1, 1], [], []>} : vector<256x128xbf16>, vector<128x128xbf16>, vector<256x128xf32> -> vector<256x128xf32>
    %c2_22 = arith.constant 2 : index
    %c0_23 = arith.constant 0 : index
    %c0_24 = arith.constant 0 : index
    %29 = vector.load %arg6[%c2_22, %c0_23, %c0_24] : memref<7x1x128xf32, #tpu.memory_space<vmem>>, vector<1x1x128xf32>
    %30 = vector.shape_cast %29 : vector<1x1x128xf32> to vector<1x128xf32>
    %31 = vector.broadcast %30 : vector<1x128xf32> to vector<256x128xf32>
    %32 = arith.addf %28, %31 : vector<256x128xf32>
    %cst_25 = arith.constant 0.000000e+00 : f32
    %33 = vector.broadcast %cst_25 : f32 to vector<256x128xf32>
    %34 = arith.maximumf %32, %33 : vector<256x128xf32>
    %35 = arith.truncf %34 : vector<256x128xf32> to vector<256x128xbf16>
    %c3 = arith.constant 3 : index
    %c0_26 = arith.constant 0 : index
    %c0_27 = arith.constant 0 : index
    %36 = vector.load %arg5[%c3, %c0_26, %c0_27] : memref<7x128x128xbf16, #tpu.memory_space<vmem>>, vector<1x128x128xbf16>
    %37 = vector.shape_cast %36 : vector<1x128x128xbf16> to vector<128x128xbf16>
    %cst_28 = arith.constant dense<0.000000e+00> : vector<256x128xf32>
    %38 = tpu.matmul %35, %37, %cst_28 {dimension_numbers = #tpu.dot_dimension_numbers<[1], [0], [0], [1], [0, 0, 1, 1], [], []>} : vector<256x128xbf16>, vector<128x128xbf16>, vector<256x128xf32> -> vector<256x128xf32>
    %c3_29 = arith.constant 3 : index
    %c0_30 = arith.constant 0 : index
    %c0_31 = arith.constant 0 : index
    %39 = vector.load %arg6[%c3_29, %c0_30, %c0_31] : memref<7x1x128xf32, #tpu.memory_space<vmem>>, vector<1x1x128xf32>
    %40 = vector.shape_cast %39 : vector<1x1x128xf32> to vector<1x128xf32>
    %41 = vector.broadcast %40 : vector<1x128xf32> to vector<256x128xf32>
    %42 = arith.addf %38, %41 : vector<256x128xf32>
    %cst_32 = arith.constant 0.000000e+00 : f32
    %43 = vector.broadcast %cst_32 : f32 to vector<256x128xf32>
    %44 = arith.maximumf %42, %43 : vector<256x128xf32>
    %45 = arith.truncf %44 : vector<256x128xf32> to vector<256x128xbf16>
    %c0_33 = arith.constant 0 : index
    %c0_34 = arith.constant 0 : index
    %46 = vector.load %arg3[%c0_33, %c0_34] : memref<16x256xf32, #tpu.memory_space<vmem>>, vector<16x256xf32>
    %47 = arith.truncf %46 : vector<16x256xf32> to vector<16x256xbf16>
    %cst_35 = arith.constant dense<0.000000e+00> : vector<16x128xf32>
    %48 = tpu.matmul %47, %45, %cst_35 {dimension_numbers = #tpu.dot_dimension_numbers<[1], [0], [0], [1], [0, 0, 1, 1], [], []>} : vector<16x256xbf16>, vector<256x128xbf16>, vector<16x128xf32> -> vector<16x128xf32>
    %c0_36 = arith.constant 0 : index
    %c0_37 = arith.constant 0 : index
    %49 = vector.load %arg4[%c0_36, %c0_37] : memref<16x1xf32, #tpu.memory_space<vmem>>, vector<16x1xf32>
    %50 = vector.broadcast %49 : vector<16x1xf32> to vector<16x128xf32>
    %51 = arith.mulf %48, %50 : vector<16x128xf32>
    %52 = arith.truncf %51 : vector<16x128xf32> to vector<16x128xbf16>
    %c4 = arith.constant 4 : index
    %c0_38 = arith.constant 0 : index
    %c0_39 = arith.constant 0 : index
    %53 = vector.load %arg5[%c4, %c0_38, %c0_39] : memref<7x128x128xbf16, #tpu.memory_space<vmem>>, vector<1x128x128xbf16>
    %54 = vector.shape_cast %53 : vector<1x128x128xbf16> to vector<128x128xbf16>
    %cst_40 = arith.constant dense<0.000000e+00> : vector<16x128xf32>
    %55 = tpu.matmul %52, %54, %cst_40 {dimension_numbers = #tpu.dot_dimension_numbers<[1], [0], [0], [1], [0, 0, 1, 1], [], []>} : vector<16x128xbf16>, vector<128x128xbf16>, vector<16x128xf32> -> vector<16x128xf32>
    %c4_41 = arith.constant 4 : index
    %c0_42 = arith.constant 0 : index
    %c0_43 = arith.constant 0 : index
    %56 = vector.load %arg6[%c4_41, %c0_42, %c0_43] : memref<7x1x128xf32, #tpu.memory_space<vmem>>, vector<1x1x128xf32>
    %57 = vector.shape_cast %56 : vector<1x1x128xf32> to vector<1x128xf32>
    %58 = vector.broadcast %57 : vector<1x128xf32> to vector<16x128xf32>
    %59 = arith.addf %55, %58 : vector<16x128xf32>
    %cst_44 = arith.constant 0.000000e+00 : f32
    %60 = vector.broadcast %cst_44 : f32 to vector<16x128xf32>
    %61 = arith.maximumf %59, %60 : vector<16x128xf32>
    %62 = arith.truncf %61 : vector<16x128xf32> to vector<16x128xbf16>
    %c5 = arith.constant 5 : index
    %c0_45 = arith.constant 0 : index
    %c0_46 = arith.constant 0 : index
    %63 = vector.load %arg5[%c5, %c0_45, %c0_46] : memref<7x128x128xbf16, #tpu.memory_space<vmem>>, vector<1x128x128xbf16>
    %64 = vector.shape_cast %63 : vector<1x128x128xbf16> to vector<128x128xbf16>
    %cst_47 = arith.constant dense<0.000000e+00> : vector<16x128xf32>
    %65 = tpu.matmul %62, %64, %cst_47 {dimension_numbers = #tpu.dot_dimension_numbers<[1], [0], [0], [1], [0, 0, 1, 1], [], []>} : vector<16x128xbf16>, vector<128x128xbf16>, vector<16x128xf32> -> vector<16x128xf32>
    %c5_48 = arith.constant 5 : index
    %c0_49 = arith.constant 0 : index
    %c0_50 = arith.constant 0 : index
    %66 = vector.load %arg6[%c5_48, %c0_49, %c0_50] : memref<7x1x128xf32, #tpu.memory_space<vmem>>, vector<1x1x128xf32>
    %67 = vector.shape_cast %66 : vector<1x1x128xf32> to vector<1x128xf32>
    %68 = vector.broadcast %67 : vector<1x128xf32> to vector<16x128xf32>
    %69 = arith.addf %65, %68 : vector<16x128xf32>
    %cst_51 = arith.constant 0.000000e+00 : f32
    %70 = vector.broadcast %cst_51 : f32 to vector<16x128xf32>
    %71 = arith.maximumf %69, %70 : vector<16x128xf32>
    %72 = arith.truncf %71 : vector<16x128xf32> to vector<16x128xbf16>
    %c6 = arith.constant 6 : index
    %c0_52 = arith.constant 0 : index
    %c0_53 = arith.constant 0 : index
    %73 = vector.load %arg5[%c6, %c0_52, %c0_53] : memref<7x128x128xbf16, #tpu.memory_space<vmem>>, vector<1x128x128xbf16>
    %74 = vector.shape_cast %73 : vector<1x128x128xbf16> to vector<128x128xbf16>
    %cst_54 = arith.constant dense<0.000000e+00> : vector<16x128xf32>
    %75 = tpu.matmul %72, %74, %cst_54 {dimension_numbers = #tpu.dot_dimension_numbers<[1], [0], [0], [1], [0, 0, 1, 1], [], []>} : vector<16x128xbf16>, vector<128x128xbf16>, vector<16x128xf32> -> vector<16x128xf32>
    %c6_55 = arith.constant 6 : index
    %c0_56 = arith.constant 0 : index
    %c0_57 = arith.constant 0 : index
    %76 = vector.load %arg6[%c6_55, %c0_56, %c0_57] : memref<7x1x128xf32, #tpu.memory_space<vmem>>, vector<1x1x128xf32>
    %77 = vector.shape_cast %76 : vector<1x1x128xf32> to vector<1x128xf32>
    %78 = vector.broadcast %77 : vector<1x128xf32> to vector<16x128xf32>
    %79 = arith.addf %75, %78 : vector<16x128xf32>
    %c0_58 = arith.constant 0 : index
    %c0_59 = arith.constant 0 : index
    %80 = vector.load %arg7[%c0_58, %c0_59] : memref<16x128xf32, #tpu.memory_space<vmem>>, vector<16x128xf32>
    tpu.vector_store %arg7[%c0_58, %c0_59], %79 {strides = array<i32>} : memref<16x128xf32, #tpu.memory_space<vmem>>, vector<16x128xf32>,
    return
  }
  func.func @transform_0(%arg0: i32) -> (i32, i32) {
    %c0_i32 = arith.constant 0 : i32
    %c0_i32_0 = arith.constant 0 : i32
    return %arg0, %c0_i32 : i32, i32
  }
  func.func @transform_1(%arg0: i32) -> (i32, i32) {
    %c0_i32 = arith.constant 0 : i32
    %c0_i32_0 = arith.constant 0 : i32
    return %arg0, %c0_i32 : i32, i32
  }
  func.func @transform_2(%arg0: i32) -> (i32, i32) {
    %c0_i32 = arith.constant 0 : i32
    %c0_i32_0 = arith.constant 0 : i32
    return %arg0, %c0_i32 : i32, i32
  }
  func.func @transform_3(%arg0: i32) -> (i32, i32) {
    %c0_i32 = arith.constant 0 : i32
    %c0_i32_0 = arith.constant 0 : i32
    return %arg0, %c0_i32 : i32, i32
  }
  func.func @transform_4(%arg0: i32) -> (i32, i32, i32) {
    %c0_i32 = arith.constant 0 : i32
    %c0_i32_0 = arith.constant 0 : i32
    %c0_i32_1 = arith.constant 0 : i32
    %c0_i32_2 = arith.constant 0 : i32
    return %c0_i32, %c0_i32_0, %c0_i32_1 : i32, i32, i32
  }
  func.func @transform_5(%arg0: i32) -> (i32, i32, i32) {
    %c0_i32 = arith.constant 0 : i32
    %c0_i32_0 = arith.constant 0 : i32
    %c0_i32_1 = arith.constant 0 : i32
    %c0_i32_2 = arith.constant 0 : i32
    return %c0_i32, %c0_i32_0, %c0_i32_1 : i32, i32, i32
  }
  func.func @transform_6(%arg0: i32) -> (i32, i32) {
    %c0_i32 = arith.constant 0 : i32
    %c0_i32_0 = arith.constant 0 : i32
    return %arg0, %c0_i32 : i32, i32
  }
}

</mosaic_0001>

<bundles_post_ra>
// kernel: tpu_custom_call.1
= control target key start
LH: loop header
LB: loop body
LE: loop exit
PB: predicated region body
PF: predicated region fallthrough
CT: control target
= control target key end

     0   :  { %s4656_s0 = inlined_call_operand.hbm [shape: bf16[512,128], index: 0, kind: input, shape index: {}]   ;;  %s4657_s1 = inlined_call_operand.hbm [shape: bf16[512,256], index: 1, kind: input, shape index: {}]   ;;  %s4658_s2 = inlined_call_operand.hbm [shape: f32[32,256], index: 2, kind: input, shape index: {}]   ;;  %s4659_s3 = inlined_call_operand.vmem [shape: f32[32,1], index: 3, kind: input, shape index: {}]   ;;  %s4660_s4 = inlined_call_operand.hbm [shape: bf16[7,128,128], index: 4, kind: input, shape index: {}]   ;;  %s4661_s5 = inlined_call_operand.vmem [shape: f32[7,1,128], index: 5, kind: input, shape index: {}]   ;;  %s4662_s6 = inlined_call_operand.hbm [shape: f32[32,128], index: 6, kind: output, shape index: {}]  }
   0x1   :  { %4677 = sst [smem:[#allocation20_spill]] %s4657_s1 }
   0x2   :  { %11 = vsyncpa [#allocation3], 0 }
   0x3   :  { %13 = vsyncpa [#allocation3 + $0x1], 0 }
   0x4   :  { %14 = vsyncpa [#allocation6], 0 }
   0x5   :  { %16 = vsyncpa [#allocation6 + $0x1], 0 }
   0x6   :  { %17 = vsyncpa [#allocation9], 0 }
   0x7   :  { %18 = vsyncpa [#allocation4], 0 }
   0x8   :  { %20 = vsyncpa [#allocation4 + $0x1], 0  ;;  %s3981_s21 = smov 0   ;;  %s3983_s22 = smov 0  }
   0x9   :  { %s3985_s23 = smov 0   ;;  %s3987_s24 = smov 0  }
   0xa LB: > { %4678 = sst [smem:[#allocation15_spill]] %s3916_s21  ;;  %s4002_s25 = sadd.s32 1, %s3928_s24   ;;  %s3928_s24 = sphi %s3987_s24, %s4703_s24   ;;  %s3924_s23 = sphi %s3985_s23, %s4705_s23   ;;  %s3920_s22 = sphi %s3983_s22, %s4707_s22   ;;  %s3916_s21 = sphi %s3981_s21, %s4706_s21  }
   0xb   : > { %4679 = sst [smem:[#allocation16_spill]] %s3924_s23  ;;  %s33_s26 = sadd.s32 1, %s3924_s23 }
   0xc   : > { %4680 = sst [smem:[#allocation17_spill]] %s4002_s25  ;;  %s30_s27 = ssub.s32 %s3928_s24, %s4002_s25 }
   0xd   : > { %p4663_p0 = scmp.ne.s32.totalorder %s3924_s23, %s3920_s22  ;;  %p31_p1 = scmp.eq.s32.totalorder %s30_s27, 0 }
   0xe   : > { %p41_p2 = scmp.eq.s32.totalorder %s3928_s24, 0  ;;  %p3558_p4 = scmp.lt.s32.totalorder %s3928_s24, 2 }
   0xf   : > { %s4013_s28 = scalar_select %p31_p1, %s3924_s23, %s33_s26  }
  0x10   : > { %p42_p5 = por %p41_p2, %p4663_p0  ;;  %s4019_s29 = sand.u32 1, %s3924_s23  }
  0x11   : > { %4681 = sst [smem:[#allocation18_spill]] %s4013_s28  ;;  %s253_s30 = sand.u32 1, %s3928_s24  }
  0x12   : > { %s2762_s7 = sshll.u32 %s4019_s29, 8  ;;  %p4023_p6 = pnand %p3558_p4, %p42_p5 }
  0x13   : > { %s2902_s9 = sshll.u32 %s3928_s24, 12  ;;  %s4683_s1 = sld [smem:[#allocation20_spill]] }
  0x14   : > { %s4682_s8 = scalar_select %p4023_p6, 1, 0 }
  0x15   : > { %s257_s13 = scalar_lea.vmem [#allocation5], %s2762_s7  ;;  %s4035_s15 = scalar_lea.sflag [#allocation6], %s253_s30 }
  0x16   : > { %s265_s14 = sshll.u32 %s257_s13, 4  ;;  %p4041_p8 = pneg %p4023_p6  ;;  %s4033_s14 = int_to_ptr.vmem [resolvable:$true] %s265_s14 }
  0x18   : > { %s4684_s17 = scalar_select %p4041_p8, 1, 0 }
  0x19   : > { %s4031_s12 = scalar_lea.hbm %s4683_s1, %s2902_s9  ;;  %s3741_s20 = scalar_lea.hbm %s4683_s1, 8192 }
  0x1a   : > { %s3736_s16 = scalar_lea.hbm %s4031_s12, 4096  ;;  %p3742_p11 = scmp.lt.u32.totalorder %s4031_s12, %s4683_s1 }
  0x1b   : > { %p3737_p7 = scmp.ne.s32.totalorder %s4031_s12, %s3736_s16  ;;  %p3743_p12 = scmp.lt.u32.totalorder %s3741_s20, %s3736_s16 }
  0x1c   : > { %p3745_p1 = scmp.lt.u32.totalorder %s3736_s16, %s4031_s12 }
  0x1d   : > { %p3739_p9 = pnand %p4041_p8, %p3737_p7  ;;  %p3744_p13 = por %p3743_p12, %p3742_p11 }
  0x1f   : > { %p3740_p10 = pneg %p3739_p9  ;;  %p3746_p2 = por %p3745_p1, %p3744_p13 }
  0x21   : > { %p3747_p4 = pnand %p3746_p2, %p3740_p10 }
  0x23   : > { %3750 = shalt.err (!%p3747_p4)
}
  0x24   : > { %s3751_s30 = scalar_lea.vmem %s4033_s14, 4096  ;;  %s3930_s7 = smov [#allocation5]  }
  0x25   : > { %p3752_p5 = scmp.ne.s32.totalorder %s4033_s14, %s3751_s30  ;;  %s3756_s9 = sshll.u32 %s3930_s7, 4  ;;  %s3757_s9 = int_to_ptr.vmem [resolvable:$false] %s3756_s9 }
  0x26   : > { %s3758_s10 = scalar_lea.vmem %s3757_s9, 8192  ;;  %p3759_p3 = scmp.lt.s32.totalorder %s4033_s14, %s3757_s9 }
  0x27   : > { %p3754_p7 = pnand %p3752_p5, %p4041_p8  ;;  %p3760_p0 = scmp.lt.s32.totalorder %s3758_s10, %s3751_s30 }
  0x29   : > { %p3755_p9 = pneg %p3754_p7  ;;  %p3761_p11 = por %p3760_p0, %p3759_p3 }
  0x2b   : > { %p3762_p12 = pnand %p3761_p11, %p3755_p9 }
  0x2d   : > { %3765 = shalt.err (!%p3762_p12)
}
  0x2e   : > { %s3931_s11 = smov 128   ;;  %s3932_s13 = smov 8  }
  0x2f   : > { %3549 = dma.hbm_to_vmem [thread:$0]  (!%p4023_p6), %s4031_s12, 4096, %s4033_s14, %s4035_s15, %s3931_s11, %s3931_s11, %s3932_s13  }
  0x30   : > { %s4066_s16 = sadd.s32 4294967295, %s3928_s24   ;;  %s2755_s18 = sadd.s32 4294967294, %s3928_s24  }
  0x31   : > { %p46_p0 = scmp.ne.s32.totalorder %s3920_s22, %s3916_s21  ;;  %p4668_p3 = scmp.eq.s32.totalorder %s4066_s16, 0 }
  0x32   : > { %p190_p10 = scmp.eq.s32.totalorder %s4066_s16, 1  ;;  %p196_p13 = scmp.eq.s32.totalorder %s2755_s18, 1 }
  0x33   : > { %p4075_p1 = por %p4668_p3, %p46_p0  ;;  %p2756_p2 = scmp.ge.s32.totalorder %s3928_s24, 1 }
  0x34   : > { %p4686_p4 = scmp.ne.s32.totalorder %s3924_s23, %s3920_s22  ;;  %p4087_p7 = por %p196_p13, %p46_p0 }
  0x35   : > { %s4685_s19 = scalar_select %p4075_p1, 1, 0 }
  0x36   : > { %p4083_p5 = por %p190_p10, %p4686_p4  ;;  %p203_p9 = scmp.lt.s32.totalorder %s3928_s24, 3 }
  0x37   : > { %s4688_s14 = scalar_select %p4087_p7, 1, 0 }
  0x38   : > { %s4687_s12 = scalar_select %p4083_p5, 1, 0 }
  0x39   : > { %4689 = sst [smem:[#allocation19_spill]] %s4688_s14  ;;  %p4092_p11 = pnand %p2756_p2, %p203_p9 }
  0x3a   : > { %s3933_s26 = smov [#allocation8]   ;;  %s2759_s30 = sshll.u32 %s4019_s29, 7 }
  0x3b   : > { %s4690_s20 = scalar_select %p4092_p11, 1, 0 }
  0x3c   : > { %s215_s27 = sshll.u32 %s3933_s26, 4  ;;  %p3539_p12 = pneg %p4092_p11  ;;  %s4096_s27 = int_to_ptr.vmem [resolvable:$true] %s215_s27 }
  0x3d   : > { %s2900_s7 = sshll.u32 %s3928_s24, 11  ;;  %s236_s18 = scalar_lea.vmem [#allocation2], %s2759_s30 }
  0x3e   : > { %p4104_p10 = pnand %p3539_p12, %p4668_p3  ;;  %s4111_s13 = scalar_lea.hbm %s4656_s0, %s2900_s7 }
  0x3f   : > { %s243_s1 = sshll.u32 %s236_s18, 4  ;;  %s3766_s23 = scalar_lea.hbm %s4660_s4, 7168  ;;  %s4113_s1 = int_to_ptr.vmem [resolvable:$true] %s243_s1 }
  0x40   : > { %p3767_p0 = scmp.ne.s32.totalorder %s4660_s4, %s3766_s23  ;;  %p3768_p13 = pneg %p4104_p10 }
  0x41   : > { %p3773_p9 = scmp.lt.u32.totalorder %s3766_s23, %s4660_s4 }
  0x42   : > { %p3769_p2 = pnand %p3768_p13, %p3767_p0 }
  0x44   : > { %p3770_p4 = pneg %p3769_p2 }
  0x46   : > { %p3775_p12 = pnand %p3773_p9, %p3770_p4 }
  0x48   : > { %3778 = shalt.err (!%p3775_p12)
}
  0x49   : > { %s3779_s30 = scalar_lea.vmem %s4096_s27, 7168  ;;  %p3787_p1 = scmp.lt.s32.totalorder %s4096_s27, %s4096_s27 }
  0x4a   : > { %p3780_p3 = scmp.ne.s32.totalorder %s4096_s27, %s3779_s30  ;;  %p3788_p11 = scmp.lt.s32.totalorder %s3779_s30, %s3779_s30 }
  0x4c   : > { %p3782_p7 = pnand %p3780_p3, %p3768_p13  ;;  %p3789_p6 = por %p3788_p11, %p3787_p1 }
  0x4e   : > { %p3783_p5 = pneg %p3782_p7 }
  0x50   : > { %p3790_p8 = pnand %p3789_p6, %p3783_p5 }
  0x52   : > { %3793 = shalt.err (!%p3790_p8)
}
  0x53   : > { %s3934_s25 = smov 64   ;;  %s3935_s23 = smov 4  }
  0x54   : > { %3542 = dma.hbm_to_vmem [thread:$0]  (!%p4104_p10), %s4660_s4, 7168, %s4096_s27, [#allocation9], %s3934_s25, %s3934_s25, %s3935_s23  }
  0x55   : > { %s233_s7 = scalar_lea.sflag [#allocation3], %s4019_s29  ;;  %s3794_s18 = scalar_lea.hbm %s4111_s13, 2048 }
  0x56   : > { %p3795_p6 = scmp.ne.s32.totalorder %s4111_s13, %s3794_s18  ;;  %p4692_p8 = scmp.ne.s32.totalorder %s4684_s17, 0 }
  0x57   : > { %s3799_s11 = scalar_lea.hbm %s4656_s0, 4096  ;;  %p3800_p5 = scmp.lt.u32.totalorder %s4111_s13, %s4656_s0 }
  0x58   : > { %p3797_p3 = pnand %p3795_p6, %p4692_p8  ;;  %p3801_p7 = scmp.lt.u32.totalorder %s3799_s11, %s3794_s18 }
  0x59   : > { %p3803_p0 = scmp.lt.u32.totalorder %s3794_s18, %s4111_s13 }
  0x5a   : > { %p3798_p1 = pneg %p3797_p3  ;;  %p3802_p11 = por %p3801_p7, %p3800_p5 }
  0x5c   : > { %p3804_p13 = por %p3803_p0, %p3802_p11 }
  0x5e   : > { %p3805_p2 = pnand %p3804_p13, %p3798_p1 }
  0x60   : > { %3808 = shalt.err (!%p3805_p2)
}
  0x61   : > { %s3809_s27 = scalar_lea.vmem %s4113_s1, 2048  ;;  %s3936_s9 = smov [#allocation2]  }
  0x62   : > { %p3810_p10 = scmp.ne.s32.totalorder %s4113_s1, %s3809_s27  ;;  %s3814_s28 = sshll.u32 %s3936_s9, 4  ;;  %s3815_s28 = int_to_ptr.vmem [resolvable:$false] %s3814_s28 }
  0x63   : > { %s3816_s21 = scalar_lea.vmem %s3815_s28, 4096  ;;  %p3817_p12 = scmp.lt.s32.totalorder %s4113_s1, %s3815_s28 }
  0x64   : > { %p3812_p4 = pnand %p3810_p10, %p4692_p8  ;;  %p3818_p6 = scmp.lt.s32.totalorder %s3816_s21, %s3809_s27 }
  0x66   : > { %p3813_p9 = pneg %p3812_p4  ;;  %p3819_p3 = por %p3818_p6, %p3817_p12 }
  0x68   : > { %p3820_p5 = pnand %p3819_p3, %p3813_p9 }
  0x6a   : > { %3823 = shalt.err (!%p3820_p5)
}
  0x6b   : > { %p4693_p1 = scmp.ne.s32.totalorder %s4682_s8, 0  ;;  %s2766_s14 = sshll.u32 %s4019_s29, 5 }
  0x6c   : > { %s2904_s18 = sshll.u32 %s3928_s24, 9  ;;  %s279_s30 = scalar_lea.vmem [#allocation7], %s2766_s14 }
  0x6d   : > { %3546 = dma.hbm_to_vmem [thread:$0]  (!%p4693_p1), %s4111_s13, 2048, %s4113_s1, %s233_s7, %s3934_s25, %s3934_s25, %s3935_s23  }
  0x6e   : > { %s4171_s11 = scalar_lea.hbm %s4658_s2, %s2904_s18  ;;  %s287_s27 = sshll.u32 %s279_s30, 4  ;;  %s4173_s27 = int_to_ptr.vmem [resolvable:$true] %s287_s27 }
  0x6f   : > { %s3824_s9 = scalar_lea.hbm %s4171_s11, 512  ;;  %s3829_s13 = scalar_lea.hbm %s4658_s2, 1024 }
  0x70   : > { %p3825_p7 = scmp.ne.s32.totalorder %s4171_s11, %s3824_s9  ;;  %p3830_p13 = scmp.lt.u32.totalorder %s4171_s11, %s4658_s2 }
  0x71   : > { %p3831_p2 = scmp.lt.u32.totalorder %s3829_s13, %s3824_s9  ;;  %p3833_p4 = scmp.lt.u32.totalorder %s3824_s9, %s4171_s11 }
  0x72   : > { %p3827_p11 = pnand %p3825_p7, %p4692_p8 }
  0x73   : > { %p3832_p10 = por %p3831_p2, %p3830_p13 }
  0x74   : > { %p3828_p0 = pneg %p3827_p11 }
  0x75   : > { %p3834_p9 = por %p3833_p4, %p3832_p10 }
  0x77   : > { %p3835_p12 = pnand %p3834_p9, %p3828_p0 }
  0x79   : > { %3838 = shalt.err (!%p3835_p12)
}
  0x7a   : > { %s3839_s7 = scalar_lea.vmem %s4173_s27, 512  ;;  %s3937_s28 = smov [#allocation7]  }
  0x7b   : > { %p3840_p6 = scmp.ne.s32.totalorder %s4173_s27, %s3839_s7  ;;  %s3844_s21 = sshll.u32 %s3937_s28, 4  ;;  %s3845_s21 = int_to_ptr.vmem [resolvable:$false] %s3844_s21 }
  0x7c   : > { %s3846_s14 = scalar_lea.vmem %s3845_s21, 1024  ;;  %p3847_p7 = scmp.lt.s32.totalorder %s4173_s27, %s3845_s21 }
  0x7d   : > { %p3842_p3 = pnand %p3840_p6, %p4692_p8  ;;  %p3848_p11 = scmp.lt.s32.totalorder %s3846_s14, %s3839_s7 }
  0x7f   : > { %p3843_p5 = pneg %p3842_p3  ;;  %p3849_p13 = por %p3848_p11, %p3847_p7 }
  0x81   : > { %p3850_p2 = pnand %p3849_p13, %p3843_p5 }
  0x83   : > { %3853 = shalt.err (!%p3850_p2)
}
  0x84   : > { %s3938_s18 = smov 256   ;;  %s3939_s26 = smov 16  }
  0x85   : > { %3552 = dma.hbm_to_vmem [thread:$0]  (!%p4693_p1), %s4171_s11, 512, %s4173_s27, %s4035_s15, %s3938_s18, %s3938_s18, %s3939_s26  }
  0x86   : > { %p4694_p8 = scmp.ne.s32.totalorder %s4690_s20, 0 }
  0x87   : > { %s4200_s17 = sand.u32 (!%p4694_p8), 1, %s3920_s22   ;;  %p4695_p0 = scmp.ne.s32.totalorder (!%p4694_p8), %s4685_s19, 0 }
  0x88   : > { %308 = sbr.rel (%p4694_p8) target bundleno = 2655 (0xa5f), region = 44  ;;  %s2771_s10 = sshll.u32 (!%p4694_p8), %s4200_s17, 7 }
  0x89   : > { %s311_s30 = scalar_lea.sflag (!%p4694_p8), [#allocation3], %s4200_s17  ;;  %s4204_s9 = scalar_lea.vmem (!%p4694_p8), [#allocation2], %s2771_s10 }
  0x8f   : > { %3899 = dma.done.wait (%p4695_p0), %s311_s30, 2048  }
  0x90   : > { %3901 = vsyncadd (%p4695_p0), %s311_s30, 4294965248  ;;  %s319_s8 = sand.u32 1, %s4066_s16   ;;  %s2772_s15 = sshll.u32 %s4200_s17, 8 }
  0x91   : > { %s320_s20 = scalar_lea.sflag [#allocation6], %s319_s8  ;;  %s4212_s11 = scalar_lea.vmem [#allocation5], %s2772_s15 }
  0x92   : > { %3903 = dma.done.wait (%p4695_p0), %s320_s20, 4608  }
  0x93   : > { %3905 = vsyncadd (%p4695_p0), %s320_s20, 4294962688  ;;  %s2773_s27 = sshll.u32 %s4200_s17, 5  ;;  %p4696_p1 = scmp.eq.s32.totalorder %s4066_s16, 0 }
  0x94   : > { %s4219_s1 = scalar_lea.vmem [#allocation7], %s2773_s27 }
  0x95   : > { %3907 = dma.done.wait (%p4696_p1), [#allocation9], 7168   ;;  %p4697_p10 = pmov %p4696_p1 }
  0x96   : > { %v3606_v0 = vld [vmem:[%s4204_s9 + $0x40] sm:$0xff]   ;;  %v3608_v2 = vld [vmem:[%s4204_s9 + $0x48] sm:$0xff]   ;;  %v3610_v4 = vld [vmem:[%s4204_s9 + $0x50] sm:$0xff]   ;;  %s2776_s14 = sshll.u32 %s4066_s16, 1  ;;  %vm3942_vm0 = vmmov 0   ;;  %s2905_s13 = sshll.u32 %s4066_s16, 8 }
  0x97   : > { %3909 = vsyncadd (%p4697_p10), [#allocation9], 4294960128  ;;  %v3607_v1 = vld [vmem:[%s4204_s9] sm:$0xff]   ;;  %2906 = vmatprep.subr.bf16.mxu0 %v3606_v0  ;;  %v3609_v3 = vld [vmem:[%s4204_s9 + $0x8] sm:$0xff]   ;;  %p384_p4 = scmp.lt.s32.totalorder %s2776_s14, 3  ;;  %s4612_s7 = scalar_lea.hbm %s4662_s6, %s2905_s13 }
  0x98   : > { %2907 = vmatpush3.bf16.msra.mxu0 %v3607_v1  ;;  %v3611_v5 = vld [vmem:[%s4204_s9 + $0x10] sm:$0xff]   ;;  %v3612_v6 = vld [vmem:[%s4204_s9 + $0x58] sm:$0xff]   ;;  %v3614_v8 = vld [vmem:[%s4204_s9 + $0x60] sm:$0xff]   ;;  %s2604_s28 = scalar_lea.sflag [#allocation4], %s4200_s17  ;;  %p4698_p12 = scmp.ne.s32.totalorder %s4687_s12, 0 }
  0x99   : > { %2908 = vmatprep.subr.bf16.mxu0 %v3608_v2  ;;  %v3613_v7 = vld [vmem:[%s4204_s9 + $0x18] sm:$0xff]   ;;  %v3615_v9 = vld [vmem:[%s4204_s9 + $0x20] sm:$0xff]   ;;  %v3616_v10 = vld [vmem:[%s4204_s9 + $0x68] sm:$0xff]   ;;  %s4709_s14 = smov (!%p384_p4, %s2776_s14), 3  ;;  %s3943_s21 = smov [#allocation10]  }
  0x9a   : > { %v4237_v11 = vld [vmem:[%s4212_s11 + $0x4] ss:$8 sps:$4 sm:$0xff]   ;;  %v3618_v13 = vld [vmem:[%s4204_s9 + $0x70] sm:$0xff]   ;;  %v3620_v15 = vld [vmem:[%s4204_s9 + $0x78] sm:$0xff]   ;;  %s2777_s18 = sshll.u32 %s4709_s14, 3  ;;  %s3858_s14 = sshll.u32 %s3943_s21, 4  ;;  %s3859_s14 = int_to_ptr.vmem [resolvable:$false] %s3858_s14 }
  0x9b   : > { %v3617_v12 = vld [vmem:[%s4204_s9 + $0x28] sm:$0xff]   ;;  %743 = vmatprep.mubr.bf16.mxu0 %v4237_v11  ;;  %v3619_v14 = vld [vmem:[%s4204_s9 + $0x30] sm:$0xff]   ;;  %v3621_v16 = vld [vmem:[%s4204_s9 + $0x38] sm:$0xff]   ;;  %s387_s30 = scalar_lea.vmem %s4659_s3, %s2777_s18  ;;  %s3860_s18 = scalar_lea.vmem %s3859_s14, 512 }
  0x9c   : > { %2909 = vmatpush3.bf16.msra.mxu0 %v3609_v3  ;;  %v3622_v17 = vld [vmem:[%s4212_s11] ss:$8 sps:$4 sm:$0xff]   ;;  %v3625_v18 = vld [vmem:[%s4212_s11 + $0x14] ss:$8 sps:$4 sm:$0xff]   ;;  %v3627_v19 = vld [vmem:[%s4212_s11 + $0x10] ss:$8 sps:$4 sm:$0xff]  }
  0x9d   : > { %2910 = vmatprep.subr.bf16.mxu0 %v3610_v4  ;;  %v3628_v20 = vld [vmem:[%s4212_s11 + $0x24] ss:$8 sps:$4 sm:$0xff]   ;;  %v3672_v23 = vld [vmem:[#allocation8 + $0x10] sm:$0xff]   ;;  %v3630_v24 = vld [vmem:[%s4212_s11 + $0x20] ss:$8 sps:$4 sm:$0xff]  }
  0x9e   : > { %v3670_v21 = vld [vmem:[#allocation8] sm:$0xff]   ;;  %v3671_v22 = vld [vmem:[#allocation8 + $0x8] sm:$0xff]   ;;  %v3673_v25 = vld [vmem:[#allocation8 + $0x18] sm:$0xff]  }
  0x9f   : > { %3275 = vmatprep.subr.bf16.mxu1 %v3670_v21  ;;  %v3631_v26 = vld [vmem:[%s4212_s11 + $0x34] ss:$8 sps:$4 sm:$0xff]   ;;  %v3633_v27 = vld [vmem:[%s4212_s11 + $0x30] ss:$8 sps:$4 sm:$0xff]   ;;  %v3634_v28 = vld [vmem:[%s4212_s11 + $0x44] ss:$8 sps:$4 sm:$0xff]  }
  0xa0   : > { %2911 = vmatpush3.bf16.msra.mxu0 %v3611_v5  ;;  %3276 = vmatpush3.bf16.msra.mxu1 %v3670_v21  ;;  %v3636_v29 = vld [vmem:[%s4212_s11 + $0x40] ss:$8 sps:$4 sm:$0xff]   ;;  %v3637_v30 = vld [vmem:[%s4212_s11 + $0x54] ss:$8 sps:$4 sm:$0xff]   ;;  %v4256_v31 = vld [vmem:[%s4212_s11 + $0x50] ss:$8 sps:$4 sm:$0xff]  }
  0xa1   : > { %2912 = vmatprep.subr.bf16.mxu0 %v3612_v6  ;;  %3277 = vmatprep.subr.bf16.mxu1 %v3671_v22  ;;  %v4259_v32 = vld [vmem:[%s4212_s11 + $0x64] ss:$8 sps:$4 sm:$0xff]   ;;  %v4264_v33 = vld [vmem:[%s4212_s11 + $0x60] ss:$8 sps:$4 sm:$0xff]   ;;  %v4267_v34 = vld [vmem:[%s4212_s11 + $0x74] ss:$8 sps:$4 sm:$0xff]  }
  0xa2   : > { %v4272_v35 = vld [vmem:[%s4212_s11 + $0x70] ss:$8 sps:$4 sm:$0xff]   ;;  %v4275_v36 = vld [vmem:[%s4212_s11 + $0x84] ss:$8 sps:$4 sm:$0xff]   ;;  %v4280_v37 = vld [vmem:[%s4212_s11 + $0x80] ss:$8 sps:$4 sm:$0xff]  }
  0xa3   : > { %v4283_v38 = vld [vmem:[%s4212_s11 + $0x94] ss:$8 sps:$4 sm:$0xff]   ;;  %v4288_v39 = vld [vmem:[%s4212_s11 + $0x90] ss:$8 sps:$4 sm:$0xff]   ;;  %v4291_v40 = vld [vmem:[%s4212_s11 + $0xa4] ss:$8 sps:$4 sm:$0xff]  }
  0xa4   : > { %2913 = vmatpush3.bf16.msra.mxu0 %v3613_v7  ;;  %3278 = vmatpush3.bf16.msra.mxu1 %v3671_v22  ;;  %v4296_v41 = vld [vmem:[%s4212_s11 + $0xa0] ss:$8 sps:$4 sm:$0xff]   ;;  %v4299_v42 = vld [vmem:[%s4212_s11 + $0xb4] ss:$8 sps:$4 sm:$0xff]   ;;  %v4304_v44 = vld [vmem:[%s4212_s11 + $0xb0] ss:$8 sps:$4 sm:$0xff]  }
  0xa5   : > { %2914 = vmatprep.subr.bf16.mxu0 %v3614_v8  ;;  %3279 = vmatprep.subr.bf16.mxu1 %v3672_v23  ;;  %v3674_v43 = vld [vmem:[#allocation8 + $0x20] sm:$0xff]   ;;  %v3675_v46 = vld [vmem:[#allocation8 + $0x28] sm:$0xff]   ;;  %v3676_v47 = vld [vmem:[#allocation8 + $0x30] sm:$0xff]  }
  0xa6   : > { %v4307_v45 = vld [vmem:[%s4212_s11 + $0xc4] ss:$8 sps:$4 sm:$0xff]   ;;  %v4312_v48 = vld [vmem:[%s4212_s11 + $0xc0] ss:$8 sps:$4 sm:$0xff]   ;;  %v4315_v49 = vld [vmem:[%s4212_s11 + $0xd4] ss:$8 sps:$4 sm:$0xff]  }
  0xa7   : > { %v3677_v50 = vld [vmem:[#allocation8 + $0x38] sm:$0xff]   ;;  %v4323_v52 = vld [vmem:[%s4212_s11 + $0xe4] ss:$8 sps:$4 sm:$0xff]   ;;  %v4328_v53 = vld [vmem:[%s4212_s11 + $0xe0] ss:$8 sps:$4 sm:$0xff]  }
  0xa8   : > { %2915 = vmatpush3.bf16.msra.mxu0 %v3615_v9  ;;  %3280 = vmatpush3.bf16.msra.mxu1 %v3672_v23  ;;  %v4320_v51 = vld [vmem:[%s4212_s11 + $0xd0] ss:$8 sps:$4 sm:$0xff]   ;;  %v4331_v54 = vld [vmem:[%s4212_s11 + $0xf4] ss:$8 sps:$4 sm:$0xff]   ;;  %v3678_v57 = vld [vmem:[#allocation8 + $0x40] sm:$0xff]  }
  0xa9   : > { %2916 = vmatprep.subr.bf16.mxu0 %v3616_v10  ;;  %3281 = vmatprep.subr.bf16.mxu1 %v3673_v25  ;;  %v4336_v55 = vld [vmem:[%s4212_s11 + $0xf0] ss:$8 sps:$4 sm:$0xff]   ;;  %v3679_v7 = vld [vmem:[#allocation8 + $0x48] sm:$0xff]   ;;  %v3682_v21 = vld [vmem:[#allocation8 + $0x60] sm:$0xff]  }
  0xac   : > { %2917 = vmatpush3.bf16.msra.mxu0 %v3617_v12  ;;  %3282 = vmatpush3.bf16.msra.mxu1 %v3673_v25  ;;  %v3680_v12 = vld [vmem:[#allocation8 + $0x50] sm:$0xff]   ;;  %v3683_v25 = vld [vmem:[#allocation8 + $0x68] sm:$0xff]  }
  0xad   : > { %2918 = vmatprep.subr.bf16.mxu0 %v3618_v13  ;;  %3283 = vmatprep.subr.bf16.mxu1 %v3674_v43 }
  0xb0   : > { %2919 = vmatpush3.bf16.msra.mxu0 %v3619_v14  ;;  %3284 = vmatpush3.bf16.msra.mxu1 %v3674_v43 }
  0xb1   : > { %2920 = vmatprep.subr.bf16.mxu0 %v3620_v15  ;;  %3285 = vmatprep.subr.bf16.mxu1 %v3675_v46 }
  0xb4   : > { %2921 = vmatpush3.bf16.msra.mxu0 %v3621_v16  ;;  %3286 = vmatpush3.bf16.msra.mxu1 %v3675_v46  ;;  %v3681_v16 = vld [vmem:[#allocation8 + $0x58] sm:$0xff]  }
  0xb5   : > { %3287 = vmatprep.subr.bf16.mxu1 %v3676_v47 }
  0xb7   : > { %744 = vmatmul.mubr.bf16.vlgmr.msra.gmra.mrb[0].mxu0 %v3622_v17 }
  0xb8   : > { %751 = vmatprep.mubr.bf16.mxu0 %v3625_v18  ;;  %3288 = vmatpush3.bf16.msra.mxu1 %v3676_v47 }
  0xb9   : > { %3289 = vmatprep.subr.bf16.mxu1 %v3677_v50 }
  0xbc   : > { %3290 = vmatpush3.bf16.msra.mxu1 %v3677_v50 }
  0xbd   : > { %3323 = vmatprep.subr.bf16.mxu1 %v3678_v57 }
  0xbf   : > { %752 = vmatmul.mubr.bf16.gmra.mrb[4].mxu0 %v3627_v19 }
  0xc0   : > { %759 = vmatprep.mubr.bf16.mxu0 %v3628_v20 }
  0xc7   : > { %760 = vmatmul.mubr.bf16.gmra.mrb[8].mxu0 %v3630_v24 }
  0xc8   : > { %767 = vmatprep.mubr.bf16.mxu0 %v3631_v26 }
  0xcf   : > { %768 = vmatmul.mubr.bf16.gmra.mrb[12].mxu0 %v3633_v27 }
  0xd0   : > { %775 = vmatprep.mubr.bf16.mxu0 %v3634_v28 }
  0xd7   : > { %776 = vmatmul.mubr.bf16.gmra.mrb[16].mxu0 %v3636_v29 }
  0xd8   : > { %783 = vmatprep.mubr.bf16.mxu0 %v3637_v30 }
  0xdf   : > { %784 = vmatmul.mubr.bf16.gmra.mrb[20].mxu0 %v4256_v31 }
  0xe0   : > { %791 = vmatprep.mubr.bf16.mxu0 %v4259_v32 }
  0xe7   : > { %792 = vmatmul.mubr.bf16.gmra.mrb[24].mxu0 %v4264_v33 }
  0xe8   : > { %799 = vmatprep.mubr.bf16.mxu0 %v4267_v34 }
  0xef   : > { %800 = vmatmul.mubr.bf16.gmra.mrb[28].mxu0 %v4272_v35 }
  0xf0   : > { %807 = vmatprep.mubr.bf16.mxu0 %v4275_v36 }
  0xf7   : > { %808 = vmatmul.mubr.bf16.gmra.mrb[32].mxu0 %v4280_v37 }
  0xf8   : > { %815 = vmatprep.mubr.bf16.mxu0 %v4283_v38 }
  0xff   : > { %816 = vmatmul.mubr.bf16.gmra.mrb[36].mxu0 %v4288_v39 }
 0x100   : > { %823 = vmatprep.mubr.bf16.mxu0 %v4291_v40 }
 0x107   : > { %824 = vmatmul.mubr.bf16.gmra.mrb[40].mxu0 %v4296_v41 }
 0x108   : > { %831 = vmatprep.mubr.bf16.mxu0 %v4299_v42 }
 0x10f   : > { %832 = vmatmul.mubr.bf16.gmra.mrb[44].mxu0 %v4304_v44 }
 0x110   : > { %839 = vmatprep.mubr.bf16.mxu0 %v4307_v45 }
 0x117   : > { %840 = vmatmul.mubr.bf16.gmra.mrb[48].mxu0 %v4312_v48 }
 0x118   : > { %847 = vmatprep.mubr.bf16.mxu0 %v4315_v49 }
 0x11f   : > { %848 = vmatmul.mubr.bf16.gmra.mrb[52].mxu0 %v4320_v51 }
 0x120   : > { %855 = vmatprep.mubr.bf16.mxu0 %v4323_v52 }
 0x127   : > { %856 = vmatmul.mubr.bf16.gmra.mrb[56].mxu0 %v4328_v53 }
 0x128   : > { %863 = vmatprep.mubr.bf16.mxu0 %v4331_v54 }
 0x12f   : > { %864 = vmatmul.mubr.bf16.gmra.mrb[60].mxu0 %v4336_v55 }
 0x130   : > { %1482 = vmatprep.mubr.bf16.mxu0 %v4237_v11 }
 0x18a   : > { %v2922_v56 = vpop.f32.mrb[0].mxu0 }
 0x18b   : > { %v2923_v58 = vpop.f32.mrb[1].mxu0 }
 0x18c   : > { %v2924_v59 = vadd.f32 %v2923_v58, %v2922_v56  ;;  %v2925_v60 = vpop.f32.mrb[2].mxu0 }
 0x18d   : > { %v2926_v61 = vpop.f32.mrb[3].mxu0 }
 0x18e   : > { %v2927_v62 = vadd.f32 %v2926_v61, %v2925_v60 }
 0x190   : > { %v872_v63 = vpack.c.bf16 %v2927_v62, %v2924_v59 }
 0x192   : > { %v2928_v0 = vpop.f32.mrb[4].mxu0  ;;  %3291 = vmatprep.mubr.bf16.mxu1 %v872_v63 }
 0x193   : > { %v2929_v1 = vpop.f32.mrb[5].mxu0 }
 0x194   : > { %v2930_v2 = vadd.f32 %v2929_v1, %v2928_v0  ;;  %v2931_v3 = vpop.f32.mrb[6].mxu0 }
 0x195   : > { %v2932_v4 = vpop.f32.mrb[7].mxu0 }
 0x196   : > { %v2933_v5 = vadd.f32 %v2932_v4, %v2931_v3 }
 0x198   : > { %v873_v6 = vpack.c.bf16 %v2933_v5, %v2930_v2 }
 0x19a   : > { %v2934_v8 = vpop.f32.mrb[8].mxu0  ;;  %3292 = vmatmul.mubr.bf16.vlgmr.msra.gmra.mrb[0].mxu1 %v873_v6 }
 0x19b   : > { %v2935_v9 = vpop.f32.mrb[9].mxu0  ;;  %3324 = vmatpush3.bf16.msra.mxu1 %v3678_v57 }
 0x19c   : > { %v2936_v10 = vadd.f32 %v2935_v9, %v2934_v8  ;;  %v2937_v11 = vpop.f32.mrb[10].mxu0  ;;  %3325 = vmatprep.subr.bf16.mxu1 %v3679_v7 }
 0x19d   : > { %v2938_v13 = vpop.f32.mrb[11].mxu0 }
 0x19e   : > { %v2939_v14 = vadd.f32 %v2938_v13, %v2937_v11 }
 0x19f   : > { %3326 = vmatpush3.bf16.msra.mxu1 %v3679_v7 }
 0x1a0   : > { %v874_v15 = vpack.c.bf16 %v2939_v14, %v2936_v10  ;;  %3327 = vmatprep.subr.bf16.mxu1 %v3680_v12 }
 0x1a2   : > { %v2940_v17 = vpop.f32.mrb[12].mxu0  ;;  %3295 = vmatprep.mubr.bf16.mxu1 %v874_v15 }
 0x1a3   : > { %v2941_v18 = vpop.f32.mrb[13].mxu0  ;;  %3328 = vmatpush3.bf16.msra.mxu1 %v3680_v12 }
 0x1a4   : > { %v2942_v19 = vadd.f32 %v2941_v18, %v2940_v17  ;;  %v2943_v20 = vpop.f32.mrb[14].mxu0  ;;  %3329 = vmatprep.subr.bf16.mxu1 %v3681_v16 }
 0x1a5   : > { %v2944_v22 = vpop.f32.mrb[15].mxu0 }
 0x1a6   : > { %v2945_v23 = vadd.f32 %v2944_v22, %v2943_v20 }
 0x1a7   : > { %3330 = vmatpush3.bf16.msra.mxu1 %v3681_v16 }
 0x1a8   : > { %v875_v24 = vpack.c.bf16 %v2945_v23, %v2942_v19  ;;  %3331 = vmatprep.subr.bf16.mxu1 %v3682_v21 }
 0x1aa   : > { %v2946_v26 = vpop.f32.mrb[16].mxu0  ;;  %3296 = vmatmul.mubr.bf16.gmra.mrb[4].mxu1 %v875_v24 }
 0x1ab   : > { %v2947_v27 = vpop.f32.mrb[17].mxu0  ;;  %3332 = vmatpush3.bf16.msra.mxu1 %v3682_v21 }
 0x1ac   : > { %v2948_v28 = vadd.f32 %v2947_v27, %v2946_v26  ;;  %v2949_v29 = vpop.f32.mrb[18].mxu0  ;;  %3333 = vmatprep.subr.bf16.mxu1 %v3683_v25 }
 0x1ad   : > { %v2950_v30 = vpop.f32.mrb[19].mxu0 }
 0x1ae   : > { %v2951_v43 = vadd.f32 %v2950_v30, %v2949_v29 }
 0x1af   : > { %3334 = vmatpush3.bf16.msra.mxu1 %v3683_v25 }
 0x1b0   : > { %v876_v46 = vpack.c.bf16 %v2951_v43, %v2948_v28 }
 0x1b2   : > { %v2952_v47 = vpop.f32.mrb[20].mxu0  ;;  %3299 = vmatprep.mubr.bf16.mxu1 %v876_v46 }
 0x1b3   : > { %v2953_v50 = vpop.f32.mrb[21].mxu0 }
 0x1b4   : > { %v2954_v56 = vadd.f32 %v2953_v50, %v2952_v47  ;;  %v2955_v57 = vpop.f32.mrb[22].mxu0 }
 0x1b5   : > { %v2956_v58 = vpop.f32.mrb[23].mxu0 }
 0x1b6   : > { %v2957_v59 = vadd.f32 %v2956_v58, %v2955_v57 }
 0x1b8   : > { %v877_v60 = vpack.c.bf16 %v2957_v59, %v2954_v56 }
 0x1ba   : > { %v2958_v61 = vpop.f32.mrb[24].mxu0  ;;  %3300 = vmatmul.mubr.bf16.gmra.mrb[8].mxu1 %v877_v60 }
 0x1bb   : > { %v2959_v62 = vpop.f32.mrb[25].mxu0 }
 0x1bc   : > { %v2960_v63 = vadd.f32 %v2959_v62, %v2958_v61  ;;  %v2961_v0 = vpop.f32.mrb[26].mxu0 }
 0x1bd   : > { %v2962_v1 = vpop.f32.mrb[27].mxu0 }
 0x1be   : > { %v2963_v2 = vadd.f32 %v2962_v1, %v2961_v0 }
 0x1c0   : > { %v878_v3 = vpack.c.bf16 %v2963_v2, %v2960_v63  ;;  %v3684_v2 = vld [vmem:[#allocation8 + $0x70] sm:$0xff]  }
 0x1c1   : > { %3335 = vmatprep.subr.bf16.mxu1 %v3684_v2 }
 0x1c2   : > { %v2964_v4 = vpop.f32.mrb[28].mxu0  ;;  %3303 = vmatprep.mubr.bf16.mxu1 %v878_v3  ;;  %3336 = vmatpush3.bf16.msra.mxu1 %v3684_v2 }
 0x1c3   : > { %v2965_v5 = vpop.f32.mrb[29].mxu0 }
 0x1c4   : > { %v2966_v6 = vadd.f32 %v2965_v5, %v2964_v4  ;;  %v2967_v7 = vpop.f32.mrb[30].mxu0  ;;  %v3685_v5 = vld [vmem:[#allocation8 + $0x78] sm:$0xff]  }
 0x1c5   : > { %v2968_v8 = vpop.f32.mrb[31].mxu0  ;;  %3337 = vmatprep.subr.bf16.mxu1 %v3685_v5 }
 0x1c6   : > { %v2969_v9 = vadd.f32 %v2968_v8, %v2967_v7  ;;  %3338 = vmatpush3.bf16.msra.mxu1 %v3685_v5 }
 0x1c8   : > { %v879_v10 = vpack.c.bf16 %v2969_v9, %v2966_v6 }
 0x1ca   : > { %v2970_v11 = vpop.f32.mrb[32].mxu0  ;;  %3304 = vmatmul.mubr.bf16.gmra.mrb[12].mxu1 %v879_v10 }
 0x1cb   : > { %v2971_v12 = vpop.f32.mrb[33].mxu0 }
 0x1cc   : > { %v2972_v13 = vadd.f32 %v2971_v12, %v2970_v11  ;;  %v2973_v14 = vpop.f32.mrb[34].mxu0 }
 0x1cd   : > { %v2974_v15 = vpop.f32.mrb[35].mxu0 }
 0x1ce   : > { %v2975_v16 = vadd.f32 %v2974_v15, %v2973_v14 }
 0x1d0   : > { %v880_v17 = vpack.c.bf16 %v2975_v16, %v2972_v13 }
 0x1d2   : > { %v2976_v18 = vpop.f32.mrb[36].mxu0  ;;  %3307 = vmatprep.mubr.bf16.mxu1 %v880_v17 }
 0x1d3   : > { %v2977_v19 = vpop.f32.mrb[37].mxu0 }
 0x1d4   : > { %v2978_v20 = vadd.f32 %v2977_v19, %v2976_v18  ;;  %v2979_v21 = vpop.f32.mrb[38].mxu0 }
 0x1d5   : > { %v2980_v22 = vpop.f32.mrb[39].mxu0 }
 0x1d6   : > { %v2981_v23 = vadd.f32 %v2980_v22, %v2979_v21 }
 0x1d8   : > { %v881_v24 = vpack.c.bf16 %v2981_v23, %v2978_v20 }
 0x1da   : > { %v2982_v25 = vpop.f32.mrb[40].mxu0  ;;  %3308 = vmatmul.mubr.bf16.gmra.mrb[16].mxu1 %v881_v24 }
 0x1db   : > { %v2983_v26 = vpop.f32.mrb[41].mxu0 }
 0x1dc   : > { %v2984_v27 = vadd.f32 %v2983_v26, %v2982_v25  ;;  %v2985_v28 = vpop.f32.mrb[42].mxu0  ;;  %v4343_v26 = vld [vmem:[%s4661_s5] ss:$0 sm:$0xff] }
 0x1dd   : > { %v2986_v29 = vpop.f32.mrb[43].mxu0 }
 0x1de   : > { %v2987_v30 = vadd.f32 %v2986_v29, %v2985_v28 }
 0x1e0   : > { %v882_v43 = vpack.c.bf16 %v2987_v30, %v2984_v27 }
 0x1e2   : > { %v2988_v46 = vpop.f32.mrb[44].mxu0  ;;  %3311 = vmatprep.mubr.bf16.mxu1 %v882_v43 }
 0x1e3   : > { %v2989_v47 = vpop.f32.mrb[45].mxu0 }
 0x1e4   : > { %v2990_v50 = vadd.f32 %v2989_v47, %v2988_v46  ;;  %v2991_v56 = vpop.f32.mrb[46].mxu0 }
 0x1e5   : > { %v2992_v57 = vpop.f32.mrb[47].mxu0 }
 0x1e6   : > { %v2993_v58 = vadd.f32 %v2992_v57, %v2991_v56 }
 0x1e8   : > { %v883_v59 = vpack.c.bf16 %v2993_v58, %v2990_v50 }
 0x1ea   : > { %v2994_v60 = vpop.f32.mrb[48].mxu0  ;;  %3312 = vmatmul.mubr.bf16.gmra.mrb[20].mxu1 %v883_v59 }
 0x1eb   : > { %v2995_v61 = vpop.f32.mrb[49].mxu0 }
 0x1ec   : > { %v2996_v62 = vadd.f32 %v2995_v61, %v2994_v60  ;;  %v2997_v63 = vpop.f32.mrb[50].mxu0 }
 0x1ed   : > { %v2998_v0 = vpop.f32.mrb[51].mxu0 }
 0x1ee   : > { %v2999_v1 = vadd.f32 %v2998_v0, %v2997_v63 }
 0x1f0   : > { %v884_v3 = vpack.c.bf16 %v2999_v1, %v2996_v62 }
 0x1f2   : > { %v3000_v4 = vpop.f32.mrb[52].mxu0  ;;  %3315 = vmatprep.mubr.bf16.mxu1 %v884_v3 }
 0x1f3   : > { %v3001_v6 = vpop.f32.mrb[53].mxu0 }
 0x1f4   : > { %v3002_v7 = vadd.f32 %v3001_v6, %v3000_v4  ;;  %v3003_v8 = vpop.f32.mrb[54].mxu0 }
 0x1f5   : > { %v3004_v9 = vpop.f32.mrb[55].mxu0 }
 0x1f6   : > { %v3005_v10 = vadd.f32 %v3004_v9, %v3003_v8 }
 0x1f8   : > { %v885_v11 = vpack.c.bf16 %v3005_v10, %v3002_v7 }
 0x1fa   : > { %v3006_v12 = vpop.f32.mrb[56].mxu0  ;;  %3316 = vmatmul.mubr.bf16.gmra.mrb[24].mxu1 %v885_v11 }
 0x1fb   : > { %v3007_v13 = vpop.f32.mrb[57].mxu0 }
 0x1fc   : > { %v3008_v14 = vadd.f32 %v3007_v13, %v3006_v12  ;;  %v3009_v15 = vpop.f32.mrb[58].mxu0 }
 0x1fd   : > { %v3010_v16 = vpop.f32.mrb[59].mxu0 }
 0x1fe   : > { %v3011_v17 = vadd.f32 %v3010_v16, %v3009_v15 }
 0x200   : > { %v886_v18 = vpack.c.bf16 %v3011_v17, %v3008_v14 }
 0x202   : > { %v3012_v19 = vpop.f32.mrb[60].mxu0  ;;  %3319 = vmatprep.mubr.bf16.mxu1 %v886_v18 }
 0x203   : > { %v3013_v20 = vpop.f32.mrb[61].mxu0 }
 0x204   : > { %v3014_v21 = vadd.f32 %v3013_v20, %v3012_v19  ;;  %v3015_v22 = vpop.f32.mrb[62].mxu0 }
 0x205   : > { %v3016_v23 = vpop.f32.mrb[63].mxu0 }
 0x206   : > { %v3017_v24 = vadd.f32 %v3016_v23, %v3015_v22 }
 0x208   : > { %v887_v25 = vpack.c.bf16 %v3017_v24, %v3014_v21 }
 0x20a   : > { %3320 = vmatmul.mubr.bf16.gmra.mrb[28].mxu1 %v887_v25 }
 0x26d   : > { %v3293_v27 = vpop.f32.mrb[0].mxu1 }
 0x26e   : > { %v1002_v28 = vadd.f32 %v3293_v27, %v4343_v26  ;;  %v993_v29 = vpop.f32.mrb[1].mxu1 }
 0x26f   : > { %v994_v30 = vadd.f32 %v4343_v26, %v993_v29  ;;  %v3294_v43 = vpop.f32.mrb[2].mxu1 }
 0x270   : > { %v1005_v46 = vadd.f32 %v3294_v43, %v4343_v26  ;;  %v996_v47 = vpop.f32.mrb[3].mxu1  ;;  %v1122_v56 = vmax.f32 %v1002_v28, 0.0 }
 0x271   : > { %v997_v50 = vadd.f32 %v4343_v26, %v996_v47  ;;  %v1120_v58 = vmax.f32 %v994_v30, 0.0 }
 0x272   : > { %v1123_v57 = vmax.f32 %v1005_v46, 0.0 }
 0x273   : > { %v1121_v59 = vmax.f32 %v997_v50, 0.0 }
 0x274   : > { %v1153_v60 = vpack.c.bf16 %v1123_v57, %v1122_v56 }
 0x275   : > { %v1152_v61 = vpack.c.bf16 %v1121_v59, %v1120_v58 }
 0x277   : > { %3339 = vmatprep.mubr.bf16.mxu1 %v1152_v61 }
 0x278   : > { %3340 = vmatmul.mubr.bf16.vlgmr.msra.gmra.mrb[32].mxu1 %v1153_v60 }
 0x27d   : > { %v3297_v62 = vpop.f32.mrb[4].mxu1 }
 0x27e   : > { %v1018_v63 = vadd.f32 %v3297_v62, %v4343_v26  ;;  %v1009_v0 = vpop.f32.mrb[5].mxu1 }
 0x27f   : > { %v1010_v1 = vadd.f32 %v4343_v26, %v1009_v0  ;;  %v3298_v2 = vpop.f32.mrb[6].mxu1 }
 0x280   : > { %v1021_v3 = vadd.f32 %v3298_v2, %v4343_v26  ;;  %v1012_v4 = vpop.f32.mrb[7].mxu1  ;;  %v1126_v6 = vmax.f32 %v1018_v63, 0.0 }
 0x281   : > { %v1013_v5 = vadd.f32 %v4343_v26, %v1012_v4  ;;  %v1124_v8 = vmax.f32 %v1010_v1, 0.0 }
 0x282   : > { %v1127_v7 = vmax.f32 %v1021_v3, 0.0 }
 0x283   : > { %v1125_v9 = vmax.f32 %v1013_v5, 0.0 }
 0x284   : > { %v1155_v10 = vpack.c.bf16 %v1127_v7, %v1126_v6 }
 0x285   : > { %v1154_v11 = vpack.c.bf16 %v1125_v9, %v1124_v8 }
 0x287   : > { %3343 = vmatprep.mubr.bf16.mxu1 %v1154_v11 }
 0x288   : > { %3344 = vmatmul.mubr.bf16.gmra.mrb[36].mxu1 %v1155_v10 }
 0x28d   : > { %v3301_v12 = vpop.f32.mrb[8].mxu1 }
 0x28e   : > { %v1034_v13 = vadd.f32 %v3301_v12, %v4343_v26  ;;  %v1025_v14 = vpop.f32.mrb[9].mxu1 }
 0x28f   : > { %v1026_v15 = vadd.f32 %v4343_v26, %v1025_v14  ;;  %v3302_v16 = vpop.f32.mrb[10].mxu1 }
 0x290   : > { %v1037_v17 = vadd.f32 %v3302_v16, %v4343_v26  ;;  %v1028_v18 = vpop.f32.mrb[11].mxu1  ;;  %v1130_v20 = vmax.f32 %v1034_v13, 0.0 }
 0x291   : > { %v1029_v19 = vadd.f32 %v4343_v26, %v1028_v18  ;;  %v1128_v22 = vmax.f32 %v1026_v15, 0.0 }
 0x292   : > { %v1131_v21 = vmax.f32 %v1037_v17, 0.0 }
 0x293   : > { %v1129_v23 = vmax.f32 %v1029_v19, 0.0 }
 0x294   : > { %v1157_v24 = vpack.c.bf16 %v1131_v21, %v1130_v20 }
 0x295   : > { %v1156_v25 = vpack.c.bf16 %v1129_v23, %v1128_v22 }
 0x297   : > { %3347 = vmatprep.mubr.bf16.mxu1 %v1156_v25 }
 0x298   : > { %3348 = vmatmul.mubr.bf16.gmra.mrb[40].mxu1 %v1157_v24 }
 0x29d   : > { %v3305_v27 = vpop.f32.mrb[12].mxu1 }
 0x29e   : > { %v1050_v28 = vadd.f32 %v3305_v27, %v4343_v26  ;;  %v1041_v29 = vpop.f32.mrb[13].mxu1 }
 0x29f   : > { %v1042_v30 = vadd.f32 %v4343_v26, %v1041_v29  ;;  %v3306_v43 = vpop.f32.mrb[14].mxu1 }
 0x2a0   : > { %v1053_v46 = vadd.f32 %v3306_v43, %v4343_v26  ;;  %v1044_v47 = vpop.f32.mrb[15].mxu1  ;;  %v1134_v56 = vmax.f32 %v1050_v28, 0.0 }
 0x2a1   : > { %v1045_v50 = vadd.f32 %v4343_v26, %v1044_v47  ;;  %v1132_v58 = vmax.f32 %v1042_v30, 0.0 }
 0x2a2   : > { %v1135_v57 = vmax.f32 %v1053_v46, 0.0 }
 0x2a3   : > { %v1133_v59 = vmax.f32 %v1045_v50, 0.0 }
 0x2a4   : > { %v1159_v60 = vpack.c.bf16 %v1135_v57, %v1134_v56 }
 0x2a5   : > { %v1158_v61 = vpack.c.bf16 %v1133_v59, %v1132_v58 }
 0x2a7   : > { %3351 = vmatprep.mubr.bf16.mxu1 %v1158_v61 }
 0x2a8   : > { %3352 = vmatmul.mubr.bf16.gmra.mrb[44].mxu1 %v1159_v60 }
 0x2ad   : > { %v3309_v62 = vpop.f32.mrb[16].mxu1 }
 0x2ae   : > { %v1066_v63 = vadd.f32 %v3309_v62, %v4343_v26  ;;  %v1057_v0 = vpop.f32.mrb[17].mxu1 }
 0x2af   : > { %v1058_v1 = vadd.f32 %v4343_v26, %v1057_v0  ;;  %v3310_v2 = vpop.f32.mrb[18].mxu1 }
 0x2b0   : > { %v1069_v3 = vadd.f32 %v3310_v2, %v4343_v26  ;;  %v1060_v4 = vpop.f32.mrb[19].mxu1  ;;  %v1138_v6 = vmax.f32 %v1066_v63, 0.0 }
 0x2b1   : > { %v1061_v5 = vadd.f32 %v4343_v26, %v1060_v4  ;;  %v1136_v8 = vmax.f32 %v1058_v1, 0.0 }
 0x2b2   : > { %v1139_v7 = vmax.f32 %v1069_v3, 0.0 }
 0x2b3   : > { %v1137_v9 = vmax.f32 %v1061_v5, 0.0 }
 0x2b4   : > { %v1161_v10 = vpack.c.bf16 %v1139_v7, %v1138_v6 }
 0x2b5   : > { %v1160_v11 = vpack.c.bf16 %v1137_v9, %v1136_v8 }
 0x2b7   : > { %3355 = vmatprep.mubr.bf16.mxu1 %v1160_v11 }
 0x2b8   : > { %3356 = vmatmul.mubr.bf16.gmra.mrb[48].mxu1 %v1161_v10 }
 0x2bd   : > { %v3313_v12 = vpop.f32.mrb[20].mxu1 }
 0x2be   : > { %v1082_v13 = vadd.f32 %v3313_v12, %v4343_v26  ;;  %v1073_v14 = vpop.f32.mrb[21].mxu1  ;;  %v4380_v12 = vld [vmem:[%s4661_s5 + $0x1] ss:$0 sm:$0xff] }
 0x2bf   : > { %v1074_v15 = vadd.f32 %v4343_v26, %v1073_v14  ;;  %v3314_v16 = vpop.f32.mrb[22].mxu1 }
 0x2c0   : > { %v1085_v17 = vadd.f32 %v3314_v16, %v4343_v26  ;;  %v1076_v18 = vpop.f32.mrb[23].mxu1  ;;  %v1142_v20 = vmax.f32 %v1082_v13, 0.0 }
 0x2c1   : > { %v1077_v19 = vadd.f32 %v4343_v26, %v1076_v18  ;;  %v1140_v22 = vmax.f32 %v1074_v15, 0.0 }
 0x2c2   : > { %v1143_v21 = vmax.f32 %v1085_v17, 0.0 }
 0x2c3   : > { %v1141_v23 = vmax.f32 %v1077_v19, 0.0 }
 0x2c4   : > { %v1163_v24 = vpack.c.bf16 %v1143_v21, %v1142_v20 }
 0x2c5   : > { %v1162_v25 = vpack.c.bf16 %v1141_v23, %v1140_v22 }
 0x2c7   : > { %3359 = vmatprep.mubr.bf16.mxu1 %v1162_v25 }
 0x2c8   : > { %3360 = vmatmul.mubr.bf16.gmra.mrb[52].mxu1 %v1163_v24 }
 0x2cd   : > { %v3317_v27 = vpop.f32.mrb[24].mxu1 }
 0x2ce   : > { %v1098_v28 = vadd.f32 %v3317_v27, %v4343_v26  ;;  %v1089_v29 = vpop.f32.mrb[25].mxu1 }
 0x2cf   : > { %v1090_v30 = vadd.f32 %v4343_v26, %v1089_v29  ;;  %v3318_v43 = vpop.f32.mrb[26].mxu1 }
 0x2d0   : > { %v1101_v46 = vadd.f32 %v3318_v43, %v4343_v26  ;;  %v1092_v47 = vpop.f32.mrb[27].mxu1  ;;  %v1146_v56 = vmax.f32 %v1098_v28, 0.0 }
 0x2d1   : > { %v1093_v50 = vadd.f32 %v4343_v26, %v1092_v47  ;;  %v1144_v58 = vmax.f32 %v1090_v30, 0.0 }
 0x2d2   : > { %v1147_v57 = vmax.f32 %v1101_v46, 0.0 }
 0x2d3   : > { %v1145_v59 = vmax.f32 %v1093_v50, 0.0 }
 0x2d4   : > { %v1165_v60 = vpack.c.bf16 %v1147_v57, %v1146_v56 }
 0x2d5   : > { %v1164_v61 = vpack.c.bf16 %v1145_v59, %v1144_v58 }
 0x2d7   : > { %3363 = vmatprep.mubr.bf16.mxu1 %v1164_v61 }
 0x2d8   : > { %3364 = vmatmul.mubr.bf16.gmra.mrb[56].mxu1 %v1165_v60 }
 0x2dd   : > { %v3321_v62 = vpop.f32.mrb[28].mxu1 }
 0x2de   : > { %v1114_v63 = vadd.f32 %v3321_v62, %v4343_v26  ;;  %v1105_v0 = vpop.f32.mrb[29].mxu1 }
 0x2df   : > { %v1106_v1 = vadd.f32 %v4343_v26, %v1105_v0  ;;  %v3322_v2 = vpop.f32.mrb[30].mxu1 }
 0x2e0   : > { %v1117_v3 = vadd.f32 %v3322_v2, %v4343_v26  ;;  %v1108_v4 = vpop.f32.mrb[31].mxu1  ;;  %v1150_v6 = vmax.f32 %v1114_v63, 0.0 }
 0x2e1   : > { %v1109_v5 = vadd.f32 %v4343_v26, %v1108_v4  ;;  %v1148_v8 = vmax.f32 %v1106_v1, 0.0 }
 0x2e2   : > { %v1151_v7 = vmax.f32 %v1117_v3, 0.0 }
 0x2e3   : > { %v1149_v9 = vmax.f32 %v1109_v5, 0.0 }
 0x2e4   : > { %v1167_v10 = vpack.c.bf16 %v1151_v7, %v1150_v6 }
 0x2e5   : > { %v1166_v11 = vpack.c.bf16 %v1149_v9, %v1148_v8 }
 0x2e7   : > { %3367 = vmatprep.mubr.bf16.mxu1 %v1166_v11 }
 0x2e8   : > { %3368 = vmatmul.mubr.bf16.gmra.mrb[60].mxu1 %v1167_v10 }
 0x34b   : > { %v3341_v13 = vpop.f32.mrb[32].mxu1 }
 0x34c   : > { %v1284_v14 = vadd.f32 %v3341_v13, %v4380_v12  ;;  %v1275_v15 = vpop.f32.mrb[33].mxu1 }
 0x34d   : > { %v1276_v16 = vadd.f32 %v4380_v12, %v1275_v15  ;;  %v3342_v26 = vpop.f32.mrb[34].mxu1 }
 0x34e   : > { %v1287_v17 = vadd.f32 %v3342_v26, %v4380_v12  ;;  %v1278_v18 = vpop.f32.mrb[35].mxu1  ;;  %v1404_v20 = vmax.f32 %v1284_v14, 0.0 }
 0x34f   : > { %v1279_v19 = vadd.f32 %v4380_v12, %v1278_v18  ;;  %v1402_v22 = vmax.f32 %v1276_v16, 0.0 }
 0x350   : > { %v1405_v21 = vmax.f32 %v1287_v17, 0.0 }
 0x351   : > { %v1403_v23 = vmax.f32 %v1279_v19, 0.0 }
 0x352   : > { %v1435_v24 = vpack.c.bf16 %v1405_v21, %v1404_v20 }
 0x353   : > { %v1434_v25 = vpack.c.bf16 %v1403_v23, %v1402_v22 }
 0x35b   : > { %v3345_v27 = vpop.f32.mrb[36].mxu1 }
 0x35c   : > { %v1300_v28 = vadd.f32 %v3345_v27, %v4380_v12  ;;  %v1291_v29 = vpop.f32.mrb[37].mxu1 }
 0x35d   : > { %v1292_v30 = vadd.f32 %v4380_v12, %v1291_v29  ;;  %v3346_v43 = vpop.f32.mrb[38].mxu1 }
 0x35e   : > { %v1303_v46 = vadd.f32 %v3346_v43, %v4380_v12  ;;  %v1294_v47 = vpop.f32.mrb[39].mxu1  ;;  %v1408_v56 = vmax.f32 %v1300_v28, 0.0 }
 0x35f   : > { %v1295_v50 = vadd.f32 %v4380_v12, %v1294_v47  ;;  %v1406_v58 = vmax.f32 %v1292_v30, 0.0 }
 0x360   : > { %v1409_v57 = vmax.f32 %v1303_v46, 0.0 }
 0x361   : > { %v1407_v59 = vmax.f32 %v1295_v50, 0.0 }
 0x362   : > { %v4390_v60 = vpack.c.bf16 %v1409_v57, %v1408_v56 }
 0x363   : > { %v1436_v61 = vpack.c.bf16 %v1407_v59, %v1406_v58 }
 0x36b   : > { %v3349_v62 = vpop.f32.mrb[40].mxu1 }
 0x36c   : > { %v1316_v63 = vadd.f32 %v3349_v62, %v4380_v12  ;;  %v1307_v0 = vpop.f32.mrb[41].mxu1 }
 0x36d   : > { %v1308_v1 = vadd.f32 %v4380_v12, %v1307_v0  ;;  %v3350_v2 = vpop.f32.mrb[42].mxu1 }
 0x36e   : > { %v1319_v3 = vadd.f32 %v3350_v2, %v4380_v12  ;;  %v1310_v4 = vpop.f32.mrb[43].mxu1  ;;  %v1412_v6 = vmax.f32 %v1316_v63, 0.0 }
 0x36f   : > { %v1311_v5 = vadd.f32 %v4380_v12, %v1310_v4  ;;  %v1410_v8 = vmax.f32 %v1308_v1, 0.0 }
 0x370   : > { %v1413_v7 = vmax.f32 %v1319_v3, 0.0 }
 0x371   : > { %v1411_v9 = vmax.f32 %v1311_v5, 0.0 }
 0x372   : > { %v4396_v10 = vpack.c.bf16 %v1413_v7, %v1412_v6 }
 0x373   : > { %v4398_v11 = vpack.c.bf16 %v1411_v9, %v1410_v8 }
 0x37b   : > { %v3353_v13 = vpop.f32.mrb[44].mxu1 }
 0x37c   : > { %v1332_v14 = vadd.f32 %v3353_v13, %v4380_v12  ;;  %v1323_v15 = vpop.f32.mrb[45].mxu1 }
 0x37d   : > { %v1324_v16 = vadd.f32 %v4380_v12, %v1323_v15  ;;  %v3354_v26 = vpop.f32.mrb[46].mxu1 }
 0x37e   : > { %v1335_v17 = vadd.f32 %v3354_v26, %v4380_v12  ;;  %v1326_v18 = vpop.f32.mrb[47].mxu1  ;;  %v1416_v20 = vmax.f32 %v1332_v14, 0.0 }
 0x37f   : > { %v1327_v19 = vadd.f32 %v4380_v12, %v1326_v18  ;;  %v1414_v22 = vmax.f32 %v1324_v16, 0.0 }
 0x380   : > { %v1417_v21 = vmax.f32 %v1335_v17, 0.0 }
 0x381   : > { %v1415_v23 = vmax.f32 %v1327_v19, 0.0 }
 0x382   : > { %v4404_v27 = vpack.c.bf16 %v1417_v21, %v1416_v20 }
 0x383   : > { %v4406_v28 = vpack.c.bf16 %v1415_v23, %v1414_v22 }
 0x38b   : > { %v3357_v29 = vpop.f32.mrb[48].mxu1 }
 0x38c   : > { %v1348_v30 = vadd.f32 %v3357_v29, %v4380_v12  ;;  %v1339_v43 = vpop.f32.mrb[49].mxu1 }
 0x38d   : > { %v1340_v46 = vadd.f32 %v4380_v12, %v1339_v43  ;;  %v3358_v47 = vpop.f32.mrb[50].mxu1 }
 0x38e   : > { %v1351_v50 = vadd.f32 %v3358_v47, %v4380_v12  ;;  %v1342_v56 = vpop.f32.mrb[51].mxu1  ;;  %v1420_v58 = vmax.f32 %v1348_v30, 0.0 }
 0x38f   : > { %v1343_v57 = vadd.f32 %v4380_v12, %v1342_v56  ;;  %v1418_v62 = vmax.f32 %v1340_v46, 0.0 }
 0x390   : > { %v1421_v59 = vmax.f32 %v1351_v50, 0.0 }
 0x391   : > { %v1419_v63 = vmax.f32 %v1343_v57, 0.0 }
 0x392   : > { %v1443_v0 = vpack.c.bf16 %v1421_v59, %v1420_v58 }
 0x393   : > { %v1442_v1 = vpack.c.bf16 %v1419_v63, %v1418_v62 }
 0x395   : > { %3066 = vmatprep.subr.bf16.mxu0 %v1442_v1 }
 0x396   : > { %3067 = vmatpush3.bf16.msra.mxu0 %v1434_v25 }
 0x397   : > { %3068 = vmatprep.subr.bf16.mxu0 %v1443_v0 }
 0x39a   : > { %3069 = vmatpush3.bf16.msra.mxu0 %v1435_v24 }
 0x39b   : > { %v3361_v2 = vpop.f32.mrb[52].mxu1 }
 0x39c   : > { %v1364_v3 = vadd.f32 %v3361_v2, %v4380_v12  ;;  %v1355_v4 = vpop.f32.mrb[53].mxu1 }
 0x39d   : > { %v1356_v5 = vadd.f32 %v4380_v12, %v1355_v4  ;;  %v3362_v6 = vpop.f32.mrb[54].mxu1 }
 0x39e   : > { %v1367_v7 = vadd.f32 %v3362_v6, %v4380_v12  ;;  %v1358_v8 = vpop.f32.mrb[55].mxu1  ;;  %v1424_v13 = vmax.f32 %v1364_v3, 0.0  ;;  %v3726_v6 = vld [vmem:[%s4212_s11] ss:$8 sps:$4 sm:$0xff]  }
 0x39f   : > { %v1359_v9 = vadd.f32 %v4380_v12, %v1358_v8  ;;  %v1422_v15 = vmax.f32 %v1356_v5, 0.0  ;;  %v3687_v5 = vld [vmem:[#allocation8 + $0x88] sm:$0xff]   ;;  %v3727_v8 = vld [vmem:[%s4212_s11 + $0x14] ss:$8 sps:$4 sm:$0xff]  }
 0x3a0   : > { %v1425_v14 = vmax.f32 %v1367_v7, 0.0  ;;  %v3689_v7 = vld [vmem:[#allocation8 + $0x98] sm:$0xff]  }
 0x3a1   : > { %v1423_v16 = vmax.f32 %v1359_v9, 0.0  ;;  %v3729_v9 = vld [vmem:[%s4212_s11 + $0x24] ss:$8 sps:$4 sm:$0xff]  }
 0x3a2   : > { %v1445_v26 = vpack.c.bf16 %v1425_v14, %v1424_v13  ;;  %v3731_v13 = vld [vmem:[%s4212_s11 + $0x34] ss:$8 sps:$4 sm:$0xff]   ;;  %v3732_v14 = vld [vmem:[%s4212_s11 + $0x30] ss:$8 sps:$4 sm:$0xff]  }
 0x3a3   : > { %v1444_v25 = vpack.c.bf16 %v1423_v16, %v1422_v15  ;;  %v3733_v15 = vld [vmem:[%s4212_s11 + $0x44] ss:$8 sps:$4 sm:$0xff]   ;;  %v3734_v16 = vld [vmem:[%s4212_s11 + $0x40] ss:$8 sps:$4 sm:$0xff]  }
 0x3a5   : > { %3070 = vmatprep.subr.bf16.mxu0 %v1444_v25 }
 0x3a6   : > { %3071 = vmatpush3.bf16.msra.mxu0 %v1436_v61 }
 0x3a7   : > { %3072 = vmatprep.subr.bf16.mxu0 %v1445_v26  ;;  %v3735_v26 = vld [vmem:[%s4212_s11 + $0x54] ss:$8 sps:$4 sm:$0xff]  }
 0x3aa   : > { %3073 = vmatpush3.bf16.msra.mxu0 %v4390_v60 }
 0x3ab   : > { %v3365_v24 = vpop.f32.mrb[56].mxu1 }
 0x3ac   : > { %v1380_v17 = vadd.f32 %v3365_v24, %v4380_v12  ;;  %v1371_v18 = vpop.f32.mrb[57].mxu1 }
 0x3ad   : > { %v1372_v19 = vadd.f32 %v4380_v12, %v1371_v18  ;;  %v3366_v20 = vpop.f32.mrb[58].mxu1  ;;  %v3696_v18 = vld [vmem:[#allocation8 + $0xd0] sm:$0xff]  }
 0x3ae   : > { %v1383_v21 = vadd.f32 %v3366_v20, %v4380_v12  ;;  %v1374_v22 = vpop.f32.mrb[59].mxu1  ;;  %v1428_v29 = vmax.f32 %v1380_v17, 0.0 }
 0x3af   : > { %v1375_v23 = vadd.f32 %v4380_v12, %v1374_v22  ;;  %v1426_v43 = vmax.f32 %v1372_v19, 0.0  ;;  %v3697_v22 = vld [vmem:[#allocation8 + $0xd8] sm:$0xff]  }
 0x3b0   : > { %v1429_v30 = vmax.f32 %v1383_v21, 0.0 }
 0x3b1   : > { %v1427_v46 = vmax.f32 %v1375_v23, 0.0 }
 0x3b2   : > { %v1447_v61 = vpack.c.bf16 %v1429_v30, %v1428_v29 }
 0x3b3   : > { %v1446_v47 = vpack.c.bf16 %v1427_v46, %v1426_v43  ;;  %v3698_v46 = vld [vmem:[#allocation8 + $0xe0] sm:$0xff]  }
 0x3b5   : > { %3074 = vmatprep.subr.bf16.mxu0 %v1446_v47 }
 0x3b6   : > { %3075 = vmatpush3.bf16.msra.mxu0 %v4398_v11 }
 0x3b7   : > { %3076 = vmatprep.subr.bf16.mxu0 %v1447_v61 }
 0x3ba   : > { %3077 = vmatpush3.bf16.msra.mxu0 %v4396_v10  ;;  %v3686_v10 = vld [vmem:[#allocation8 + $0x80] sm:$0xff]  }
 0x3bb   : > { %v3369_v60 = vpop.f32.mrb[60].mxu1  ;;  %3371 = vmatprep.subr.bf16.mxu1 %v3686_v10 }
 0x3bc   : > { %v1396_v50 = vadd.f32 %v3369_v60, %v4380_v12  ;;  %v1387_v56 = vpop.f32.mrb[61].mxu1  ;;  %3372 = vmatpush3.bf16.msra.mxu1 %v3686_v10 }
 0x3bd   : > { %v1388_v57 = vadd.f32 %v4380_v12, %v1387_v56  ;;  %v3370_v58 = vpop.f32.mrb[62].mxu1  ;;  %3373 = vmatprep.subr.bf16.mxu1 %v3687_v5 }
 0x3be   : > { %v1399_v59 = vadd.f32 %v3370_v58, %v4380_v12  ;;  %v1390_v62 = vpop.f32.mrb[63].mxu1  ;;  %v1432_v0 = vmax.f32 %v1396_v50, 0.0  ;;  %v3699_v50 = vld [vmem:[#allocation8 + $0xe8] sm:$0xff]  }
 0x3bf   : > { %v1391_v63 = vadd.f32 %v4380_v12, %v1390_v62  ;;  %v1430_v2 = vmax.f32 %v1388_v57, 0.0  ;;  %v3688_v12 = vld [vmem:[#allocation8 + $0x90] sm:$0xff]  }
 0x3c0   : > { %v1433_v1 = vmax.f32 %v1399_v59, 0.0  ;;  %3374 = vmatpush3.bf16.msra.mxu1 %v3687_v5 }
 0x3c1   : > { %v1431_v11 = vmax.f32 %v1391_v63, 0.0  ;;  %3375 = vmatprep.subr.bf16.mxu1 %v3688_v12 }
 0x3c2   : > { %v1449_v3 = vpack.c.bf16 %v1433_v1, %v1432_v0 }
 0x3c3   : > { %v1448_v4 = vpack.c.bf16 %v1431_v11, %v1430_v2 }
 0x3c4   : > { %3376 = vmatpush3.bf16.msra.mxu1 %v3688_v12 }
 0x3c5   : > { %3078 = vmatprep.subr.bf16.mxu0 %v1448_v4  ;;  %3377 = vmatprep.subr.bf16.mxu1 %v3689_v7 }
 0x3c6   : > { %3079 = vmatpush3.bf16.msra.mxu0 %v4406_v28  ;;  %v3728_v28 = vld [vmem:[%s4212_s11 + $0x10] ss:$8 sps:$4 sm:$0xff]  }
 0x3c7   : > { %3080 = vmatprep.subr.bf16.mxu0 %v1449_v3 }
 0x3c8   : > { %3378 = vmatpush3.bf16.msra.mxu1 %v3689_v7 }
 0x3ca   : > { %3081 = vmatpush3.bf16.msra.mxu0 %v4404_v27  ;;  %v3730_v27 = vld [vmem:[%s4212_s11 + $0x20] ss:$8 sps:$4 sm:$0xff]   ;;  %s2775_s11 = sshll.u32 %s4200_s17, 4 }
 0x3cb   : > { %s379_s19 = scalar_lea.vmem [#allocation10], %s2775_s11 }
 0x3cc   : > { %s2617_s29 = sshll.u32 %s379_s19, 4  ;;  %s4607_s29 = int_to_ptr.vmem [resolvable:$true] %s2617_s29 }
 0x3cd   : > { %1483 = vmatmul.mubr.bf16.vlgmr.msra.gmra.mrb[64].mxu0 %v3726_v6  ;;  %s3854_s16 = scalar_lea.vmem %s4607_s29, 256  ;;  %p3861_p5 = scmp.lt.s32.totalorder %s4607_s29, %s3859_s14 }
 0x3ce   : > { %1490 = vmatprep.mubr.bf16.mxu0 %v3727_v8  ;;  %p3855_p9 = scmp.ne.s32.totalorder %s4607_s29, %s3854_s16  ;;  %p3862_p7 = scmp.lt.s32.totalorder %s3860_s18, %s3854_s16 }
 0x3d0   : > { %p3856_p6 = pnand %p3855_p9, %p4698_p12  ;;  %p3863_p11 = por %p3862_p7, %p3861_p5 }
 0x3d2   : > { %p3857_p3 = pneg %p3856_p6 }
 0x3d4   : > { %p3864_p13 = pnand %p3863_p11, %p3857_p3 }
 0x3d5   : > { %1491 = vmatmul.mubr.bf16.gmra.mrb[68].mxu0 %v3728_v28 }
 0x3d6   : > { %1498 = vmatprep.mubr.bf16.mxu0 %v3729_v9 }
 0x3dd   : > { %1499 = vmatmul.mubr.bf16.gmra.mrb[72].mxu0 %v3730_v27 }
 0x3de   : > { %1506 = vmatprep.mubr.bf16.mxu0 %v3731_v13 }
 0x3e5   : > { %1507 = vmatmul.mubr.bf16.gmra.mrb[76].mxu0 %v3732_v14 }
 0x3e6   : > { %1514 = vmatprep.mubr.bf16.mxu0 %v3733_v15 }
 0x3ed   : > { %1515 = vmatmul.mubr.bf16.gmra.mrb[80].mxu0 %v3734_v16 }
 0x3ee   : > { %1522 = vmatprep.mubr.bf16.mxu0 %v3735_v26 }
 0x3f5   : > { %1523 = vmatmul.mubr.bf16.gmra.mrb[84].mxu0 %v4256_v31  ;;  %v3690_v31 = vld [vmem:[#allocation8 + $0xa0] sm:$0xff]  }
 0x3f6   : > { %1530 = vmatprep.mubr.bf16.mxu0 %v4259_v32  ;;  %3379 = vmatprep.subr.bf16.mxu1 %v3690_v31  ;;  %v3691_v32 = vld [vmem:[#allocation8 + $0xa8] sm:$0xff]  }
 0x3f7   : > { %3380 = vmatpush3.bf16.msra.mxu1 %v3690_v31 }
 0x3f8   : > { %3381 = vmatprep.subr.bf16.mxu1 %v3691_v32 }
 0x3fb   : > { %3382 = vmatpush3.bf16.msra.mxu1 %v3691_v32 }
 0x3fd   : > { %1531 = vmatmul.mubr.bf16.gmra.mrb[88].mxu0 %v4264_v33  ;;  %v3692_v33 = vld [vmem:[#allocation8 + $0xb0] sm:$0xff]  }
 0x3fe   : > { %1538 = vmatprep.mubr.bf16.mxu0 %v4267_v34  ;;  %3383 = vmatprep.subr.bf16.mxu1 %v3692_v33  ;;  %v3693_v34 = vld [vmem:[#allocation8 + $0xb8] sm:$0xff]  }
 0x3ff   : > { %3384 = vmatpush3.bf16.msra.mxu1 %v3692_v33 }
 0x400   : > { %3385 = vmatprep.subr.bf16.mxu1 %v3693_v34 }
 0x403   : > { %3386 = vmatpush3.bf16.msra.mxu1 %v3693_v34 }
 0x405   : > { %1539 = vmatmul.mubr.bf16.gmra.mrb[92].mxu0 %v4272_v35 }
 0x406   : > { %1546 = vmatprep.mubr.bf16.mxu0 %v4275_v36  ;;  %v3694_v36 = vld [vmem:[#allocation8 + $0xc0] sm:$0xff]  }
 0x407   : > { %3419 = vmatprep.subr.bf16.mxu1 %v3694_v36 }
 0x40d   : > { %1547 = vmatmul.mubr.bf16.gmra.mrb[96].mxu0 %v4280_v37 }
 0x40e   : > { %1554 = vmatprep.mubr.bf16.mxu0 %v4283_v38 }
 0x415   : > { %1555 = vmatmul.mubr.bf16.gmra.mrb[100].mxu0 %v4288_v39 }
 0x416   : > { %1562 = vmatprep.mubr.bf16.mxu0 %v4291_v40 }
 0x41d   : > { %1563 = vmatmul.mubr.bf16.gmra.mrb[104].mxu0 %v4296_v41 }
 0x41e   : > { %1570 = vmatprep.mubr.bf16.mxu0 %v4299_v42 }
 0x425   : > { %1571 = vmatmul.mubr.bf16.gmra.mrb[108].mxu0 %v4304_v44 }
 0x426   : > { %1578 = vmatprep.mubr.bf16.mxu0 %v4307_v45 }
 0x42d   : > { %1579 = vmatmul.mubr.bf16.gmra.mrb[112].mxu0 %v4312_v48 }
 0x42e   : > { %1586 = vmatprep.mubr.bf16.mxu0 %v4315_v49 }
 0x435   : > { %1587 = vmatmul.mubr.bf16.gmra.mrb[116].mxu0 %v4320_v51 }
 0x436   : > { %1594 = vmatprep.mubr.bf16.mxu0 %v4323_v52 }
 0x43d   : > { %1595 = vmatmul.mubr.bf16.gmra.mrb[120].mxu0 %v4328_v53 }
 0x43e   : > { %1602 = vmatprep.mubr.bf16.mxu0 %v4331_v54  ;;  %v3695_v54 = vld [vmem:[#allocation8 + $0xc8] sm:$0xff]  }
 0x445   : > { %1603 = vmatmul.mubr.bf16.gmra.mrb[124].mxu0 %v4336_v55 }
 0x4a0   : > { %v3082_v35 = vpop.f32.mrb[64].mxu0 }
 0x4a1   : > { %v3083_v37 = vpop.f32.mrb[65].mxu0 }
 0x4a2   : > { %v3084_v38 = vadd.f32 %v3083_v37, %v3082_v35  ;;  %v3085_v39 = vpop.f32.mrb[66].mxu0 }
 0x4a3   : > { %v3086_v40 = vpop.f32.mrb[67].mxu0 }
 0x4a4   : > { %v3087_v41 = vadd.f32 %v3086_v40, %v3085_v39 }
 0x4a6   : > { %v1611_v42 = vpack.c.bf16 %v3087_v41, %v3084_v38 }
 0x4a8   : > { %v3088_v44 = vpop.f32.mrb[68].mxu0  ;;  %3387 = vmatprep.mubr.bf16.mxu1 %v1611_v42 }
 0x4a9   : > { %v3089_v45 = vpop.f32.mrb[69].mxu0 }
 0x4aa   : > { %v3090_v48 = vadd.f32 %v3089_v45, %v3088_v44  ;;  %v3091_v49 = vpop.f32.mrb[70].mxu0 }
 0x4ab   : > { %v3092_v51 = vpop.f32.mrb[71].mxu0 }
 0x4ac   : > { %v3093_v52 = vadd.f32 %v3092_v51, %v3091_v49 }
 0x4ae   : > { %v1612_v53 = vpack.c.bf16 %v3093_v52, %v3090_v48 }
 0x4b0   : > { %v3094_v25 = vpop.f32.mrb[72].mxu0  ;;  %3388 = vmatmul.mubr.bf16.vlgmr.msra.gmra.mrb[64].mxu1 %v1612_v53 }
 0x4b1   : > { %v3095_v55 = vpop.f32.mrb[73].mxu0  ;;  %3420 = vmatpush3.bf16.msra.mxu1 %v3694_v36 }
 0x4b2   : > { %v3096_v24 = vadd.f32 %v3095_v55, %v3094_v25  ;;  %v3097_v17 = vpop.f32.mrb[74].mxu0  ;;  %3421 = vmatprep.subr.bf16.mxu1 %v3695_v54 }
 0x4b3   : > { %v3098_v19 = vpop.f32.mrb[75].mxu0 }
 0x4b4   : > { %v3099_v20 = vadd.f32 %v3098_v19, %v3097_v17 }
 0x4b5   : > { %3422 = vmatpush3.bf16.msra.mxu1 %v3695_v54 }
 0x4b6   : > { %v1613_v21 = vpack.c.bf16 %v3099_v20, %v3096_v24  ;;  %3423 = vmatprep.subr.bf16.mxu1 %v3696_v18 }
 0x4b8   : > { %v3100_v23 = vpop.f32.mrb[76].mxu0  ;;  %3391 = vmatprep.mubr.bf16.mxu1 %v1613_v21 }
 0x4b9   : > { %v3101_v29 = vpop.f32.mrb[77].mxu0  ;;  %3424 = vmatpush3.bf16.msra.mxu1 %v3696_v18 }
 0x4ba   : > { %v3102_v30 = vadd.f32 %v3101_v29, %v3100_v23  ;;  %v3103_v43 = vpop.f32.mrb[78].mxu0  ;;  %3425 = vmatprep.subr.bf16.mxu1 %v3697_v22 }
 0x4bb   : > { %v3104_v61 = vpop.f32.mrb[79].mxu0 }
 0x4bc   : > { %v3105_v47 = vadd.f32 %v3104_v61, %v3103_v43 }
 0x4bd   : > { %3426 = vmatpush3.bf16.msra.mxu1 %v3697_v22 }
 0x4be   : > { %v1614_v60 = vpack.c.bf16 %v3105_v47, %v3102_v30  ;;  %3427 = vmatprep.subr.bf16.mxu1 %v3698_v46 }
 0x4c0   : > { %v3106_v56 = vpop.f32.mrb[80].mxu0  ;;  %3392 = vmatmul.mubr.bf16.gmra.mrb[68].mxu1 %v1614_v60  ;;  %v3700_v60 = vld [vmem:[#allocation8 + $0xf0] sm:$0xff]  }
 0x4c1   : > { %v3107_v57 = vpop.f32.mrb[81].mxu0  ;;  %3428 = vmatpush3.bf16.msra.mxu1 %v3698_v46 }
 0x4c2   : > { %v3108_v58 = vadd.f32 %v3107_v57, %v3106_v56  ;;  %v3109_v59 = vpop.f32.mrb[82].mxu0  ;;  %3429 = vmatprep.subr.bf16.mxu1 %v3699_v50  ;;  %v3701_v57 = vld [vmem:[#allocation8 + $0xf8] sm:$0xff]  }
 0x4c3   : > { %v3110_v62 = vpop.f32.mrb[83].mxu0 }
 0x4c4   : > { %v3111_v63 = vadd.f32 %v3110_v62, %v3109_v59 }
 0x4c5   : > { %3430 = vmatpush3.bf16.msra.mxu1 %v3699_v50 }
 0x4c6   : > { %v1615_v0 = vpack.c.bf16 %v3111_v63, %v3108_v58  ;;  %3431 = vmatprep.subr.bf16.mxu1 %v3700_v60 }
 0x4c8   : > { %v3112_v1 = vpop.f32.mrb[84].mxu0  ;;  %3395 = vmatprep.mubr.bf16.mxu1 %v1615_v0 }
 0x4c9   : > { %v3113_v2 = vpop.f32.mrb[85].mxu0  ;;  %3432 = vmatpush3.bf16.msra.mxu1 %v3700_v60 }
 0x4ca   : > { %v3114_v11 = vadd.f32 %v3113_v2, %v3112_v1  ;;  %v3115_v3 = vpop.f32.mrb[86].mxu0  ;;  %3433 = vmatprep.subr.bf16.mxu1 %v3701_v57 }
 0x4cb   : > { %v3116_v4 = vpop.f32.mrb[87].mxu0 }
 0x4cc   : > { %v3117_v10 = vadd.f32 %v3116_v4, %v3115_v3 }
 0x4cd   : > { %3434 = vmatpush3.bf16.msra.mxu1 %v3701_v57 }
 0x4ce   : > { %v1616_v5 = vpack.c.bf16 %v3117_v10, %v3114_v11 }
 0x4d0   : > { %v3118_v12 = vpop.f32.mrb[88].mxu0  ;;  %3396 = vmatmul.mubr.bf16.gmra.mrb[72].mxu1 %v1616_v5 }
 0x4d1   : > { %v3119_v6 = vpop.f32.mrb[89].mxu0 }
 0x4d2   : > { %v3120_v7 = vadd.f32 %v3119_v6, %v3118_v12  ;;  %v3121_v8 = vpop.f32.mrb[90].mxu0 }
 0x4d3   : > { %v3122_v28 = vpop.f32.mrb[91].mxu0 }
 0x4d4   : > { %v3123_v9 = vadd.f32 %v3122_v28, %v3121_v8 }
 0x4d6   : > { %v1617_v27 = vpack.c.bf16 %v3123_v9, %v3120_v7 }
 0x4d8   : > { %v3124_v13 = vpop.f32.mrb[92].mxu0  ;;  %3399 = vmatprep.mubr.bf16.mxu1 %v1617_v27 }
 0x4d9   : > { %v3125_v14 = vpop.f32.mrb[93].mxu0 }
 0x4da   : > { %v3126_v15 = vadd.f32 %v3125_v14, %v3124_v13  ;;  %v3127_v16 = vpop.f32.mrb[94].mxu0  ;;  %v4463_v14 = vld [vmem:[%s4661_s5 + $0x2] ss:$0 sm:$0xff] }
 0x4db   : > { %v3128_v26 = vpop.f32.mrb[95].mxu0 }
 0x4dc   : > { %v3129_v31 = vadd.f32 %v3128_v26, %v3127_v16 }
 0x4de   : > { %v1618_v32 = vpack.c.bf16 %v3129_v31, %v3126_v15 }
 0x4e0   : > { %v3130_v33 = vpop.f32.mrb[96].mxu0  ;;  %3400 = vmatmul.mubr.bf16.gmra.mrb[76].mxu1 %v1618_v32 }
 0x4e1   : > { %v3131_v34 = vpop.f32.mrb[97].mxu0 }
 0x4e2   : > { %v3132_v35 = vadd.f32 %v3131_v34, %v3130_v33  ;;  %v3133_v36 = vpop.f32.mrb[98].mxu0 }
 0x4e3   : > { %v3134_v37 = vpop.f32.mrb[99].mxu0 }
 0x4e4   : > { %v3135_v38 = vadd.f32 %v3134_v37, %v3133_v36 }
 0x4e6   : > { %v1619_v39 = vpack.c.bf16 %v3135_v38, %v3132_v35 }
 0x4e8   : > { %v3136_v40 = vpop.f32.mrb[100].mxu0  ;;  %3403 = vmatprep.mubr.bf16.mxu1 %v1619_v39 }
 0x4e9   : > { %v3137_v41 = vpop.f32.mrb[101].mxu0 }
 0x4ea   : > { %v3138_v42 = vadd.f32 %v3137_v41, %v3136_v40  ;;  %v3139_v44 = vpop.f32.mrb[102].mxu0 }
 0x4eb   : > { %v3140_v45 = vpop.f32.mrb[103].mxu0 }
 0x4ec   : > { %v3141_v48 = vadd.f32 %v3140_v45, %v3139_v44 }
 0x4ee   : > { %v1620_v49 = vpack.c.bf16 %v3141_v48, %v3138_v42 }
 0x4f0   : > { %3404 = vmatmul.mubr.bf16.gmra.mrb[80].mxu1 %v1620_v49  ;;  %v3142_v51 = vpop.f32.mrb[104].mxu0 }
 0x4f1   : > { %v3143_v52 = vpop.f32.mrb[105].mxu0 }
 0x4f2   : > { %v3144_v53 = vadd.f32 %v3143_v52, %v3142_v51  ;;  %v3145_v54 = vpop.f32.mrb[106].mxu0 }
 0x4f3   : > { %v3146_v25 = vpop.f32.mrb[107].mxu0 }
 0x4f4   : > { %v3147_v55 = vadd.f32 %v3146_v25, %v3145_v54 }
 0x4f6   : > { %v1621_v24 = vpack.c.bf16 %v3147_v55, %v3144_v53 }
 0x4f8   : > { %v3148_v17 = vpop.f32.mrb[108].mxu0  ;;  %3407 = vmatprep.mubr.bf16.mxu1 %v1621_v24 }
 0x4f9   : > { %v3149_v18 = vpop.f32.mrb[109].mxu0 }
 0x4fa   : > { %v3150_v19 = vadd.f32 %v3149_v18, %v3148_v17  ;;  %v3151_v20 = vpop.f32.mrb[110].mxu0 }
 0x4fb   : > { %v3152_v21 = vpop.f32.mrb[111].mxu0 }
 0x4fc   : > { %v3153_v22 = vadd.f32 %v3152_v21, %v3151_v20 }
 0x4fe   : > { %v1622_v23 = vpack.c.bf16 %v3153_v22, %v3150_v19 }
 0x500   : > { %3408 = vmatmul.mubr.bf16.gmra.mrb[84].mxu1 %v1622_v23  ;;  %v3154_v29 = vpop.f32.mrb[112].mxu0 }
 0x501   : > { %v3155_v30 = vpop.f32.mrb[113].mxu0 }
 0x502   : > { %v3156_v43 = vadd.f32 %v3155_v30, %v3154_v29  ;;  %v3157_v46 = vpop.f32.mrb[114].mxu0 }
 0x503   : > { %v3158_v61 = vpop.f32.mrb[115].mxu0 }
 0x504   : > { %v3159_v47 = vadd.f32 %v3158_v61, %v3157_v46 }
 0x506   : > { %v1623_v50 = vpack.c.bf16 %v3159_v47, %v3156_v43 }
 0x508   : > { %v3160_v56 = vpop.f32.mrb[116].mxu0  ;;  %3411 = vmatprep.mubr.bf16.mxu1 %v1623_v50 }
 0x509   : > { %v3161_v58 = vpop.f32.mrb[117].mxu0 }
 0x50a   : > { %v3162_v59 = vadd.f32 %v3161_v58, %v3160_v56  ;;  %v3163_v62 = vpop.f32.mrb[118].mxu0 }
 0x50b   : > { %v3164_v63 = vpop.f32.mrb[119].mxu0 }
 0x50c   : > { %v3165_v0 = vadd.f32 %v3164_v63, %v3163_v62 }
 0x50e   : > { %v1624_v1 = vpack.c.bf16 %v3165_v0, %v3162_v59 }
 0x510   : > { %3412 = vmatmul.mubr.bf16.gmra.mrb[88].mxu1 %v1624_v1  ;;  %v3166_v2 = vpop.f32.mrb[120].mxu0 }
 0x511   : > { %v3167_v11 = vpop.f32.mrb[121].mxu0 }
 0x512   : > { %v3168_v3 = vadd.f32 %v3167_v11, %v3166_v2  ;;  %v3169_v4 = vpop.f32.mrb[122].mxu0 }
 0x513   : > { %v3170_v10 = vpop.f32.mrb[123].mxu0 }
 0x514   : > { %v3171_v5 = vadd.f32 %v3170_v10, %v3169_v4 }
 0x516   : > { %v1625_v12 = vpack.c.bf16 %v3171_v5, %v3168_v3 }
 0x518   : > { %v3172_v6 = vpop.f32.mrb[124].mxu0  ;;  %3415 = vmatprep.mubr.bf16.mxu1 %v1625_v12 }
 0x519   : > { %v3173_v7 = vpop.f32.mrb[125].mxu0 }
 0x51a   : > { %v3174_v8 = vadd.f32 %v3173_v7, %v3172_v6  ;;  %v3175_v28 = vpop.f32.mrb[126].mxu0 }
 0x51b   : > { %v3176_v9 = vpop.f32.mrb[127].mxu0 }
 0x51c   : > { %v3177_v27 = vadd.f32 %v3176_v9, %v3175_v28 }
 0x51e   : > { %v1626_v13 = vpack.c.bf16 %v3177_v27, %v3174_v8 }
 0x520   : > { %3416 = vmatmul.mubr.bf16.gmra.mrb[92].mxu1 %v1626_v13 }
 0x583   : > { %v3389_v15 = vpop.f32.mrb[64].mxu1 }
 0x584   : > { %v1743_v16 = vadd.f32 %v3389_v15, %v4463_v14  ;;  %v1734_v26 = vpop.f32.mrb[65].mxu1 }
 0x585   : > { %v1735_v31 = vadd.f32 %v4463_v14, %v1734_v26  ;;  %v3390_v32 = vpop.f32.mrb[66].mxu1 }
 0x586   : > { %v1746_v33 = vadd.f32 %v3390_v32, %v4463_v14  ;;  %v1737_v34 = vpop.f32.mrb[67].mxu1  ;;  %v1863_v36 = vmax.f32 %v1743_v16, 0.0 }
 0x587   : > { %v1738_v35 = vadd.f32 %v4463_v14, %v1737_v34  ;;  %v1861_v38 = vmax.f32 %v1735_v31, 0.0 }
 0x588   : > { %v1864_v37 = vmax.f32 %v1746_v33, 0.0 }
 0x589   : > { %v1862_v39 = vmax.f32 %v1738_v35, 0.0 }
 0x58a   : > { %v1894_v40 = vpack.c.bf16 %v1864_v37, %v1863_v36 }
 0x58b   : > { %v1893_v41 = vpack.c.bf16 %v1862_v39, %v1861_v38 }
 0x58d   : > { %3435 = vmatprep.mubr.bf16.mxu1 %v1893_v41 }
 0x58e   : > { %3436 = vmatmul.mubr.bf16.vlgmr.msra.gmra.mrb[96].mxu1 %v1894_v40 }
 0x593   : > { %v3393_v42 = vpop.f32.mrb[68].mxu1 }
 0x594   : > { %v1759_v44 = vadd.f32 %v3393_v42, %v4463_v14  ;;  %v1750_v45 = vpop.f32.mrb[69].mxu1 }
 0x595   : > { %v1751_v48 = vadd.f32 %v4463_v14, %v1750_v45  ;;  %v3394_v49 = vpop.f32.mrb[70].mxu1 }
 0x596   : > { %v1762_v51 = vadd.f32 %v3394_v49, %v4463_v14  ;;  %v1753_v52 = vpop.f32.mrb[71].mxu1  ;;  %v1867_v54 = vmax.f32 %v1759_v44, 0.0 }
 0x597   : > { %v1754_v53 = vadd.f32 %v4463_v14, %v1753_v52  ;;  %v1865_v55 = vmax.f32 %v1751_v48, 0.0 }
 0x598   : > { %v1868_v25 = vmax.f32 %v1762_v51, 0.0 }
 0x599   : > { %v1866_v24 = vmax.f32 %v1754_v53, 0.0 }
 0x59a   : > { %v1896_v17 = vpack.c.bf16 %v1868_v25, %v1867_v54 }
 0x59b   : > { %v1895_v18 = vpack.c.bf16 %v1866_v24, %v1865_v55 }
 0x59d   : > { %3439 = vmatprep.mubr.bf16.mxu1 %v1895_v18 }
 0x59e   : > { %3440 = vmatmul.mubr.bf16.gmra.mrb[100].mxu1 %v1896_v17 }
 0x5a3   : > { %v3397_v19 = vpop.f32.mrb[72].mxu1 }
 0x5a4   : > { %v1775_v20 = vadd.f32 %v3397_v19, %v4463_v14  ;;  %v1766_v21 = vpop.f32.mrb[73].mxu1 }
 0x5a5   : > { %v1767_v22 = vadd.f32 %v4463_v14, %v1766_v21  ;;  %v3398_v23 = vpop.f32.mrb[74].mxu1 }
 0x5a6   : > { %v1778_v29 = vadd.f32 %v3398_v23, %v4463_v14  ;;  %v1769_v30 = vpop.f32.mrb[75].mxu1  ;;  %v1871_v46 = vmax.f32 %v1775_v20, 0.0 }
 0x5a7   : > { %v1770_v43 = vadd.f32 %v4463_v14, %v1769_v30  ;;  %v1869_v47 = vmax.f32 %v1767_v22, 0.0 }
 0x5a8   : > { %v1872_v61 = vmax.f32 %v1778_v29, 0.0 }
 0x5a9   : > { %v1870_v60 = vmax.f32 %v1770_v43, 0.0 }
 0x5aa   : > { %v1898_v50 = vpack.c.bf16 %v1872_v61, %v1871_v46 }
 0x5ab   : > { %v1897_v56 = vpack.c.bf16 %v1870_v60, %v1869_v47 }
 0x5ad   : > { %3443 = vmatprep.mubr.bf16.mxu1 %v1897_v56 }
 0x5ae   : > { %3444 = vmatmul.mubr.bf16.gmra.mrb[104].mxu1 %v1898_v50 }
 0x5b3   : > { %v3401_v57 = vpop.f32.mrb[76].mxu1 }
 0x5b4   : > { %v1791_v58 = vadd.f32 %v3401_v57, %v4463_v14  ;;  %v1782_v59 = vpop.f32.mrb[77].mxu1 }
 0x5b5   : > { %v1783_v62 = vadd.f32 %v4463_v14, %v1782_v59  ;;  %v3402_v63 = vpop.f32.mrb[78].mxu1 }
 0x5b6   : > { %v1794_v0 = vadd.f32 %v3402_v63, %v4463_v14  ;;  %v1785_v1 = vpop.f32.mrb[79].mxu1  ;;  %v1875_v11 = vmax.f32 %v1791_v58, 0.0 }
 0x5b7   : > { %v1786_v2 = vadd.f32 %v4463_v14, %v1785_v1  ;;  %v1873_v4 = vmax.f32 %v1783_v62, 0.0 }
 0x5b8   : > { %v1876_v3 = vmax.f32 %v1794_v0, 0.0 }
 0x5b9   : > { %v1874_v10 = vmax.f32 %v1786_v2, 0.0  ;;  %v4500_v2 = vld [vmem:[%s4661_s5 + $0x3] ss:$0 sm:$0xff] }
 0x5ba   : > { %v1900_v5 = vpack.c.bf16 %v1876_v3, %v1875_v11  ;;  %v2192_v11 = vld [vmem:[%s4219_s1 + $0x8] sm:$0xff]  ;;  %v2194_v3 = vld [vmem:[%s4219_s1 + $0x18] sm:$0xff] }
 0x5bb   : > { %v1899_v12 = vpack.c.bf16 %v1874_v10, %v1873_v4  ;;  %v2196_v4 = vpack.c.bf16 %v2194_v3, %v2192_v11 }
 0x5bd   : > { %3447 = vmatprep.mubr.bf16.mxu1 %v1899_v12  ;;  %2229 = vmatprep.mubr.bf16.mxu0 %v2196_v4 }
 0x5be   : > { %3448 = vmatmul.mubr.bf16.gmra.mrb[108].mxu1 %v1900_v5 }
 0x5c3   : > { %v3405_v6 = vpop.f32.mrb[80].mxu1 }
 0x5c4   : > { %v1807_v7 = vadd.f32 %v3405_v6, %v4463_v14  ;;  %v1798_v8 = vpop.f32.mrb[81].mxu1 }
 0x5c5   : > { %v1799_v28 = vadd.f32 %v4463_v14, %v1798_v8  ;;  %v3406_v9 = vpop.f32.mrb[82].mxu1 }
 0x5c6   : > { %v1810_v27 = vadd.f32 %v3406_v9, %v4463_v14  ;;  %v1801_v13 = vpop.f32.mrb[83].mxu1  ;;  %v1879_v16 = vmax.f32 %v1807_v7, 0.0  ;;  %v3702_v7 = vld [vmem:[#allocation8 + $0x100] sm:$0xff]   ;;  %v3940_v9 = vmov 0  }
 0x5c7   : > { %v1802_v15 = vadd.f32 %v4463_v14, %v1801_v13  ;;  %v1877_v31 = vmax.f32 %v1799_v28, 0.0  ;;  %3605 = vset.pattern.permute.xlu0 %v3940_v9 }
 0x5c8   : > { %v1880_v26 = vmax.f32 %v1810_v27, 0.0  ;;  %v3941_v27 = vmov 0.0  }
 0x5c9   : > { %v1878_v32 = vmax.f32 %v1802_v15, 0.0  ;;  %3467 = vmatprep.subr.bf16.mxu1 %v3941_v27  ;;  %v3703_v15 = vld [vmem:[#allocation8 + $0x108] sm:$0xff]  }
 0x5ca   : > { %v1902_v33 = vpack.c.bf16 %v1880_v26, %v1879_v16  ;;  %3468 = vmatpush3.bf16.msra.mxu1 %v3702_v7 }
 0x5cb   : > { %v1901_v34 = vpack.c.bf16 %v1878_v32, %v1877_v31  ;;  %3469 = vmatprep.subr.bf16.mxu1 %v3941_v27 }
 0x5cd   : > { %3451 = vmatprep.mubr.bf16.mxu1 %v1901_v34 }
 0x5ce   : > { %3452 = vmatmul.mubr.bf16.gmra.mrb[112].mxu1 %v1902_v33 }
 0x5cf   : > { %3470 = vmatpush3.bf16.msra.mxu1 %v3703_v15 }
 0x5d0   : > { %3471 = vmatprep.subr.bf16.mxu1 %v3941_v27 }
 0x5d3   : > { %v3409_v35 = vpop.f32.mrb[84].mxu1 }
 0x5d4   : > { %v1823_v36 = vadd.f32 %v3409_v35, %v4463_v14  ;;  %v1814_v37 = vpop.f32.mrb[85].mxu1  ;;  %v3704_v35 = vld [vmem:[#allocation8 + $0x110] sm:$0xff]  }
 0x5d5   : > { %v1815_v38 = vadd.f32 %v4463_v14, %v1814_v37  ;;  %v3410_v39 = vpop.f32.mrb[86].mxu1  ;;  %v2239_v37 = vld [vmem:[%s387_s30 + $0x8] sm:$0xff]  ;;  %3472 = vmatpush3.bf16.msra.mxu1 %v3704_v35 }
 0x5d6   : > { %v1826_v40 = vadd.f32 %v3410_v39, %v4463_v14  ;;  %v1817_v41 = vpop.f32.mrb[87].mxu1  ;;  %v1883_v44 = vmax.f32 %v1823_v36, 0.0  ;;  %v2238_v36 = vld [vmem:[%s387_s30] sm:$0xff]  ;;  %3473 = vmatprep.subr.bf16.mxu1 %v3941_v27 }
 0x5d7   : > { %v1818_v42 = vadd.f32 %v4463_v14, %v1817_v41  ;;  %v1881_v48 = vmax.f32 %v1815_v38, 0.0  ;;  %2242 = vperm.xlu0 %3605, %v2238_v36   ;;  %v3705_v38 = vld [vmem:[#allocation8 + $0x118] sm:$0xff]  }
 0x5d8   : > { %v1884_v45 = vmax.f32 %v1826_v40, 0.0  ;;  %v3706_v40 = vld [vmem:[#allocation8 + $0x120] sm:$0xff]  }
 0x5d9   : > { %v1882_v49 = vmax.f32 %v1818_v42, 0.0  ;;  %3474 = vmatpush3.bf16.msra.mxu1 %v3705_v38 }
 0x5da   : > { %v1904_v51 = vpack.c.bf16 %v1884_v45, %v1883_v44  ;;  %3475 = vmatprep.subr.bf16.mxu1 %v3941_v27 }
 0x5db   : > { %v1903_v52 = vpack.c.bf16 %v1882_v49, %v1881_v48  ;;  %2247 = vperm.xlu0 %3605, %v2239_v37  }
 0x5dd   : > { %3455 = vmatprep.mubr.bf16.mxu1 %v1903_v52  ;;  %3476 = vmatpush3.bf16.msra.mxu1 %v3706_v40  ;;  %v3707_v52 = vld [vmem:[#allocation8 + $0x128] sm:$0xff]  }
 0x5de   : > { %3456 = vmatmul.mubr.bf16.gmra.mrb[116].mxu1 %v1904_v51  ;;  %3477 = vmatprep.subr.bf16.mxu1 %v3941_v27 }
 0x5e1   : > { %3478 = vmatpush3.bf16.msra.mxu1 %v3707_v52 }
 0x5e2   : > { %3479 = vmatprep.subr.bf16.mxu1 %v3941_v27 }
 0x5e3   : > { %v3413_v53 = vpop.f32.mrb[88].mxu1 }
 0x5e4   : > { %v1839_v54 = vadd.f32 %v3413_v53, %v4463_v14  ;;  %v1830_v25 = vpop.f32.mrb[89].mxu1 }
 0x5e5   : > { %v1831_v55 = vadd.f32 %v4463_v14, %v1830_v25  ;;  %v3414_v24 = vpop.f32.mrb[90].mxu1 }
 0x5e6   : > { %v1842_v17 = vadd.f32 %v3414_v24, %v4463_v14  ;;  %v1833_v18 = vpop.f32.mrb[91].mxu1  ;;  %v1887_v20 = vmax.f32 %v1839_v54, 0.0 }
 0x5e7   : > { %v1834_v19 = vadd.f32 %v4463_v14, %v1833_v18  ;;  %v1885_v22 = vmax.f32 %v1831_v55, 0.0 }
 0x5e8   : > { %v1888_v21 = vmax.f32 %v1842_v17, 0.0 }
 0x5e9   : > { %v1886_v23 = vmax.f32 %v1834_v19, 0.0 }
 0x5ea   : > { %v1906_v29 = vpack.c.bf16 %v1888_v21, %v1887_v20 }
 0x5eb   : > { %v1905_v30 = vpack.c.bf16 %v1886_v23, %v1885_v22 }
 0x5ed   : > { %3459 = vmatprep.mubr.bf16.mxu1 %v1905_v30 }
 0x5ee   : > { %3460 = vmatmul.mubr.bf16.gmra.mrb[120].mxu1 %v1906_v29 }
 0x5f3   : > { %v3417_v43 = vpop.f32.mrb[92].mxu1 }
 0x5f4   : > { %v1855_v46 = vadd.f32 %v3417_v43, %v4463_v14  ;;  %v1846_v61 = vpop.f32.mrb[93].mxu1 }
 0x5f5   : > { %v1847_v47 = vadd.f32 %v4463_v14, %v1846_v61  ;;  %v3418_v60 = vpop.f32.mrb[94].mxu1 }
 0x5f6   : > { %v1858_v50 = vadd.f32 %v3418_v60, %v4463_v14  ;;  %v1849_v56 = vpop.f32.mrb[95].mxu1  ;;  %v1891_v58 = vmax.f32 %v1855_v46, 0.0 }
 0x5f7   : > { %v1850_v57 = vadd.f32 %v4463_v14, %v1849_v56  ;;  %v1889_v62 = vmax.f32 %v1847_v47, 0.0 }
 0x5f8   : > { %v1892_v59 = vmax.f32 %v1858_v50, 0.0 }
 0x5f9   : > { %v1890_v63 = vmax.f32 %v1850_v57, 0.0 }
 0x5fa   : > { %v1908_v0 = vpack.c.bf16 %v1892_v59, %v1891_v58 }
 0x5fb   : > { %v1907_v1 = vpack.c.bf16 %v1890_v63, %v1889_v62 }
 0x5fd   : > { %3463 = vmatprep.mubr.bf16.mxu1 %v1907_v1 }
 0x5fe   : > { %3464 = vmatmul.mubr.bf16.gmra.mrb[124].mxu1 %v1908_v0 }
 0x5ff   : > { %3483 = vmatprep.mubr.msk.bf16.mxu1 %vm3942_vm0, %v3941_v27 }
 0x661   : > { %v3437_v10 = vpop.f32.mrb[96].mxu1 }
 0x662   : > { %v2025_v14 = vadd.f32 %v3437_v10, %v4500_v2  ;;  %v2016_v5 = vpop.f32.mrb[97].mxu1 }
 0x663   : > { %v2017_v12 = vadd.f32 %v4500_v2, %v2016_v5  ;;  %v3438_v6 = vpop.f32.mrb[98].mxu1 }
 0x664   : > { %v2028_v8 = vadd.f32 %v3438_v6, %v4500_v2  ;;  %v2019_v28 = vpop.f32.mrb[99].mxu1  ;;  %v2145_v16 = vmax.f32 %v2025_v14, 0.0 }
 0x665   : > { %v2020_v13 = vadd.f32 %v4500_v2, %v2019_v28  ;;  %v2143_v31 = vmax.f32 %v2017_v12, 0.0 }
 0x666   : > { %v2146_v26 = vmax.f32 %v2028_v8, 0.0 }
 0x667   : > { %v2144_v32 = vmax.f32 %v2020_v13, 0.0 }
 0x668   : > { %v4511_v33 = vpack.c.bf16 %v2146_v26, %v2145_v16 }
 0x669   : > { %v4513_v34 = vpack.c.bf16 %v2144_v32, %v2143_v31 }
 0x671   : > { %v3441_v39 = vpop.f32.mrb[100].mxu1 }
 0x672   : > { %v2041_v41 = vadd.f32 %v3441_v39, %v4500_v2  ;;  %v2032_v42 = vpop.f32.mrb[101].mxu1 }
 0x673   : > { %v2033_v44 = vadd.f32 %v4500_v2, %v2032_v42  ;;  %v3442_v45 = vpop.f32.mrb[102].mxu1 }
 0x674   : > { %v2044_v48 = vadd.f32 %v3442_v45, %v4500_v2  ;;  %v2035_v49 = vpop.f32.mrb[103].mxu1  ;;  %v2149_v53 = vmax.f32 %v2041_v41, 0.0 }
 0x675   : > { %v2036_v51 = vadd.f32 %v4500_v2, %v2035_v49  ;;  %v2147_v25 = vmax.f32 %v2033_v44, 0.0 }
 0x676   : > { %v2150_v54 = vmax.f32 %v2044_v48, 0.0 }
 0x677   : > { %v2148_v55 = vmax.f32 %v2036_v51, 0.0 }
 0x678   : > { %v4526_v24 = vpack.c.bf16 %v2150_v54, %v2149_v53 }
 0x679   : > { %v4528_v17 = vpack.c.bf16 %v2148_v55, %v2147_v25 }
 0x681   : > { %v3445_v18 = vpop.f32.mrb[104].mxu1 }
 0x682   : > { %v2057_v19 = vadd.f32 %v3445_v18, %v4500_v2  ;;  %v2048_v20 = vpop.f32.mrb[105].mxu1 }
 0x683   : > { %v2049_v21 = vadd.f32 %v4500_v2, %v2048_v20  ;;  %v3446_v22 = vpop.f32.mrb[106].mxu1 }
 0x684   : > { %v2060_v23 = vadd.f32 %v3446_v22, %v4500_v2  ;;  %v2051_v29 = vpop.f32.mrb[107].mxu1  ;;  %v2153_v43 = vmax.f32 %v2057_v19, 0.0 }
 0x685   : > { %v2052_v30 = vadd.f32 %v4500_v2, %v2051_v29  ;;  %v2151_v61 = vmax.f32 %v2049_v21, 0.0 }
 0x686   : > { %v2154_v46 = vmax.f32 %v2060_v23, 0.0 }
 0x687   : > { %v2152_v47 = vmax.f32 %v2052_v30, 0.0 }
 0x688   : > { %v4535_v60 = vpack.c.bf16 %v2154_v46, %v2153_v43 }
 0x689   : > { %v4537_v50 = vpack.c.bf16 %v2152_v47, %v2151_v61 }
 0x691   : > { %v3449_v56 = vpop.f32.mrb[108].mxu1 }
 0x692   : > { %v2073_v57 = vadd.f32 %v3449_v56, %v4500_v2  ;;  %v2064_v58 = vpop.f32.mrb[109].mxu1 }
 0x693   : > { %v2065_v59 = vadd.f32 %v4500_v2, %v2064_v58  ;;  %v3450_v62 = vpop.f32.mrb[110].mxu1 }
 0x694   : > { %v2076_v63 = vadd.f32 %v3450_v62, %v4500_v2  ;;  %v2067_v0 = vpop.f32.mrb[111].mxu1  ;;  %v2157_v11 = vmax.f32 %v2073_v57, 0.0 }
 0x695   : > { %v2068_v1 = vadd.f32 %v4500_v2, %v2067_v0  ;;  %v2155_v4 = vmax.f32 %v2065_v59, 0.0 }
 0x696   : > { %v2158_v3 = vmax.f32 %v2076_v63, 0.0 }
 0x697   : > { %v2156_v10 = vmax.f32 %v2068_v1, 0.0 }
 0x698   : > { %v4543_v14 = vpack.c.bf16 %v2158_v3, %v2157_v11  ;;  %v2191_v11 = vld [vmem:[%s4219_s1] sm:$0xff]  ;;  %v2193_v3 = vld [vmem:[%s4219_s1 + $0x10] sm:$0xff] }
 0x699   : > { %v4545_v5 = vpack.c.bf16 %v2156_v10, %v2155_v4  ;;  %v2195_v4 = vpack.c.bf16 %v2193_v3, %v2191_v11  ;;  %v3708_v10 = vld [vmem:[#allocation8 + $0x130] sm:$0xff]  }
 0x69a   : > { %3480 = vmatpush3.bf16.msra.mxu1 %v3708_v10 }
 0x69b   : > { %3481 = vmatprep.subr.bf16.mxu1 %v3941_v27 }
 0x6a1   : > { %v3453_v12 = vpop.f32.mrb[112].mxu1 }
 0x6a2   : > { %v2089_v6 = vadd.f32 %v3453_v12, %v4500_v2  ;;  %v2080_v7 = vpop.f32.mrb[113].mxu1  ;;  %v3712_v12 = vld [vmem:[#allocation8 + $0x150] sm:$0xff]  }
 0x6a3   : > { %v2081_v8 = vadd.f32 %v4500_v2, %v2080_v7  ;;  %v3454_v28 = vpop.f32.mrb[114].mxu1  ;;  %v3714_v7 = vld [vmem:[#allocation8 + $0x160] sm:$0xff]  }
 0x6a4   : > { %v2092_v9 = vadd.f32 %v3454_v28, %v4500_v2  ;;  %v2083_v13 = vpop.f32.mrb[115].mxu1  ;;  %v2161_v16 = vmax.f32 %v2089_v6, 0.0  ;;  %v3713_v6 = vld [vmem:[#allocation8 + $0x158] sm:$0xff]   ;;  %v2243_v28 = vpop.permute.xlu0 %2242 }
 0x6a5   : > { %v2084_v15 = vadd.f32 %v4500_v2, %v2083_v13  ;;  %v2159_v31 = vmax.f32 %v2081_v8, 0.0  ;;  %v3715_v8 = vld [vmem:[#allocation8 + $0x168] sm:$0xff]  }
 0x6a6   : > { %v2162_v26 = vmax.f32 %v2092_v9, 0.0 }
 0x6a7   : > { %v2160_v32 = vmax.f32 %v2084_v15, 0.0 }
 0x6a8   : > { %v2184_v35 = vpack.c.bf16 %v2162_v26, %v2161_v16 }
 0x6a9   : > { %v2183_v36 = vpack.c.bf16 %v2160_v32, %v2159_v31  ;;  %v2248_v32 = vpop.permute.xlu0 %2247 }
 0x6ab   : > { %3226 = vmatprep.subr.bf16.mxu0 %v2183_v36 }
 0x6ac   : > { %3227 = vmatpush3.bf16.msra.mxu0 %v4513_v34 }
 0x6ad   : > { %3228 = vmatprep.subr.bf16.mxu0 %v2184_v35 }
 0x6b0   : > { %3229 = vmatpush3.bf16.msra.mxu0 %v4511_v33 }
 0x6b1   : > { %v3457_v37 = vpop.f32.mrb[116].mxu1 }
 0x6b2   : > { %v2105_v38 = vadd.f32 %v3457_v37, %v4500_v2  ;;  %v2096_v39 = vpop.f32.mrb[117].mxu1 }
 0x6b3   : > { %v2097_v40 = vadd.f32 %v4500_v2, %v2096_v39  ;;  %v3458_v41 = vpop.f32.mrb[118].mxu1  ;;  %v3717_v39 = vld [vmem:[#allocation8 + $0x178] sm:$0xff]  }
 0x6b4   : > { %v2108_v42 = vadd.f32 %v3458_v41, %v4500_v2  ;;  %v2099_v44 = vpop.f32.mrb[119].mxu1  ;;  %v2165_v48 = vmax.f32 %v2105_v38, 0.0  ;;  %v3716_v38 = vld [vmem:[#allocation8 + $0x170] sm:$0xff]   ;;  %v3719_v41 = vld [vmem:[#allocation8 + $0x188] sm:$0xff]  }
 0x6b5   : > { %v2100_v45 = vadd.f32 %v4500_v2, %v2099_v44  ;;  %v2163_v51 = vmax.f32 %v2097_v40, 0.0  ;;  %v3718_v40 = vld [vmem:[#allocation8 + $0x180] sm:$0xff]   ;;  %v3721_v44 = vld [vmem:[#allocation8 + $0x198] sm:$0xff]  }
 0x6b6   : > { %v2166_v49 = vmax.f32 %v2108_v42, 0.0  ;;  %v3720_v42 = vld [vmem:[#allocation8 + $0x190] sm:$0xff]  }
 0x6b7   : > { %v2164_v52 = vmax.f32 %v2100_v45, 0.0  ;;  %v3722_v45 = vld [vmem:[#allocation8 + $0x1a0] sm:$0xff]  }
 0x6b8   : > { %v2186_v34 = vpack.c.bf16 %v2166_v49, %v2165_v48  ;;  %v3723_v48 = vld [vmem:[#allocation8 + $0x1a8] sm:$0xff]   ;;  %v2866_v49 = vld [vmem:[%s4661_s5 + $0x4] ss:$0 sm:$0xff] }
 0x6b9   : > { %v2185_v53 = vpack.c.bf16 %v2164_v52, %v2163_v51 }
 0x6bb   : > { %3230 = vmatprep.subr.bf16.mxu0 %v2185_v53 }
 0x6bc   : > { %3231 = vmatpush3.bf16.msra.mxu0 %v4528_v17 }
 0x6bd   : > { %3232 = vmatprep.subr.bf16.mxu0 %v2186_v34 }
 0x6c0   : > { %3233 = vmatpush3.bf16.msra.mxu0 %v4526_v24 }
 0x6c1   : > { %v3461_v33 = vpop.f32.mrb[120].mxu1 }
 0x6c2   : > { %v2121_v54 = vadd.f32 %v3461_v33, %v4500_v2  ;;  %v2112_v25 = vpop.f32.mrb[121].mxu1 }
 0x6c3   : > { %v2113_v55 = vadd.f32 %v4500_v2, %v2112_v25  ;;  %v3462_v18 = vpop.f32.mrb[122].mxu1 }
 0x6c4   : > { %v2124_v19 = vadd.f32 %v3462_v18, %v4500_v2  ;;  %v2115_v20 = vpop.f32.mrb[123].mxu1  ;;  %v2169_v22 = vmax.f32 %v2121_v54, 0.0 }
 0x6c5   : > { %v2116_v21 = vadd.f32 %v4500_v2, %v2115_v20  ;;  %v2167_v29 = vmax.f32 %v2113_v55, 0.0  ;;  %v3725_v20 = vld [vmem:[#allocation8 + $0x1b8] sm:$0xff]  }
 0x6c6   : > { %v2170_v23 = vmax.f32 %v2124_v19, 0.0  ;;  %v3724_v19 = vld [vmem:[#allocation8 + $0x1b0] sm:$0xff]  }
 0x6c7   : > { %v2168_v30 = vmax.f32 %v2116_v21, 0.0  ;;  %v2876_v21 = vld [vmem:[%s4661_s5 + $0x5] ss:$0 sm:$0xff] }
 0x6c8   : > { %v2188_v17 = vpack.c.bf16 %v2170_v23, %v2169_v22 }
 0x6c9   : > { %v2187_v43 = vpack.c.bf16 %v2168_v30, %v2167_v29 }
 0x6cb   : > { %3234 = vmatprep.subr.bf16.mxu0 %v2187_v43 }
 0x6cc   : > { %3235 = vmatpush3.bf16.msra.mxu0 %v4537_v50 }
 0x6cd   : > { %3236 = vmatprep.subr.bf16.mxu0 %v2188_v17 }
 0x6d0   : > { %3237 = vmatpush3.bf16.msra.mxu0 %v4535_v60 }
 0x6d1   : > { %v3465_v24 = vpop.f32.mrb[124].mxu1 }
 0x6d2   : > { %v2137_v46 = vadd.f32 %v3465_v24, %v4500_v2  ;;  %v2128_v61 = vpop.f32.mrb[125].mxu1 }
 0x6d3   : > { %v2129_v47 = vadd.f32 %v4500_v2, %v2128_v61  ;;  %v3466_v56 = vpop.f32.mrb[126].mxu1 }
 0x6d4   : > { %v2140_v57 = vadd.f32 %v3466_v56, %v4500_v2  ;;  %v2131_v58 = vpop.f32.mrb[127].mxu1  ;;  %v2173_v62 = vmax.f32 %v2137_v46, 0.0 }
 0x6d5   : > { %v2132_v59 = vadd.f32 %v4500_v2, %v2131_v58  ;;  %v2171_v50 = vmax.f32 %v2129_v47, 0.0  ;;  %v3709_v2 = vld [vmem:[#allocation8 + $0x138] sm:$0xff]  }
 0x6d6   : > { %v2174_v63 = vmax.f32 %v2140_v57, 0.0  ;;  %3482 = vmatpush3.bf16.msra.mxu1 %v3709_v2 }
 0x6d7   : > { %v2172_v0 = vmax.f32 %v2132_v59, 0.0  ;;  %3507 = vmatprep.subr.bf16.mxu1 %v3941_v27 }
 0x6d8   : > { %v2190_v1 = vpack.c.bf16 %v2174_v63, %v2173_v62 }
 0x6d9   : > { %v2189_v60 = vpack.c.bf16 %v2172_v0, %v2171_v50 }
 0x6db   : > { %3238 = vmatprep.subr.bf16.mxu0 %v2189_v60 }
 0x6dc   : > { %3239 = vmatpush3.bf16.msra.mxu0 %v4545_v5  ;;  %v3710_v5 = vld [vmem:[#allocation8 + $0x140] sm:$0xff]  }
 0x6dd   : > { %3240 = vmatprep.subr.bf16.mxu0 %v2190_v1 }
 0x6e0   : > { %3241 = vmatpush3.bf16.msra.mxu0 %v4543_v14  ;;  %v3711_v14 = vld [vmem:[#allocation8 + $0x148] sm:$0xff]  }
 0x6e1   : > { %3487 = vmatprep.subr.bf16.mxu0 %v3941_v27 }
 0x6e3   : > { %2230 = vmatmul.mubr.bf16.vlgmr.msra.gmra.mrb[128].mxu0 %v2195_v4 }
 0x6e4   : > { %3503 = vmatprep.mubr.msk.bf16.mxu0 %vm3942_vm0, %v3941_v27  ;;  %3488 = vmatpush3.bf16.msra.mxu0 %v3710_v5 }
 0x6e5   : > { %3489 = vmatprep.subr.bf16.mxu0 %v3941_v27 }
 0x6e8   : > { %3490 = vmatpush3.bf16.msra.mxu0 %v3711_v14 }
 0x6e9   : > { %3491 = vmatprep.subr.bf16.mxu0 %v3941_v27 }
 0x6ec   : > { %3492 = vmatpush3.bf16.msra.mxu0 %v3712_v12 }
 0x6ed   : > { %3493 = vmatprep.subr.bf16.mxu0 %v3941_v27 }
 0x6f0   : > { %3494 = vmatpush3.bf16.msra.mxu0 %v3713_v6 }
 0x6f1   : > { %3495 = vmatprep.subr.bf16.mxu0 %v3941_v27 }
 0x6f4   : > { %3496 = vmatpush3.bf16.msra.mxu0 %v3714_v7 }
 0x6f5   : > { %3497 = vmatprep.subr.bf16.mxu0 %v3941_v27 }
 0x6f8   : > { %3498 = vmatpush3.bf16.msra.mxu0 %v3715_v8 }
 0x6f9   : > { %3499 = vmatprep.subr.bf16.mxu0 %v3941_v27 }
 0x6fc   : > { %3500 = vmatpush3.bf16.msra.mxu0 %v3716_v38 }
 0x6fd   : > { %3501 = vmatprep.subr.bf16.mxu0 %v3941_v27 }
 0x700   : > { %3502 = vmatpush3.bf16.msra.mxu0 %v3717_v39 }
 0x7b6   : > { %v3242_v9 = vpop.f32.mrb[128].mxu0 }
 0x7b7   : > { %v3243_v13 = vpop.f32.mrb[129].mxu0 }
 0x7b8   : > { %v3244_v15 = vadd.f32 %v3243_v13, %v3242_v9  ;;  %v3245_v16 = vpop.f32.mrb[130].mxu0 }
 0x7b9   : > { %v3246_v26 = vpop.f32.mrb[131].mxu0 }
 0x7ba   : > { %v3247_v31 = vadd.f32 %v3246_v26, %v3245_v16  ;;  %v2250_v35 = vmul.f32 %v3244_v15, %v2243_v28 }
 0x7bc   : > { %v2251_v36 = vmul.f32 %v3247_v31, %v2248_v32 }
 0x7be   : > { %v2252_v37 = vpack.c.bf16 %v2251_v36, %v2250_v35 }
 0x7c0   : > { %3484 = vmatmul.mubr.bf16.vlgmr.msra.gmra.mrb[128].mxu1 %v2252_v37 }
 0x7c1   : > { %3523 = vmatprep.mubr.msk.bf16.mxu1 %vm3942_vm0, %v3941_v27  ;;  %3508 = vmatpush3.bf16.msra.mxu1 %v3718_v40 }
 0x7c2   : > { %3509 = vmatprep.subr.bf16.mxu1 %v3941_v27 }
 0x7c5   : > { %3510 = vmatpush3.bf16.msra.mxu1 %v3719_v41 }
 0x7c6   : > { %3511 = vmatprep.subr.bf16.mxu1 %v3941_v27 }
 0x7c9   : > { %3512 = vmatpush3.bf16.msra.mxu1 %v3720_v42 }
 0x7ca   : > { %3513 = vmatprep.subr.bf16.mxu1 %v3941_v27 }
 0x7cd   : > { %3514 = vmatpush3.bf16.msra.mxu1 %v3721_v44 }
 0x7ce   : > { %3515 = vmatprep.subr.bf16.mxu1 %v3941_v27 }
 0x7d1   : > { %3516 = vmatpush3.bf16.msra.mxu1 %v3722_v45 }
 0x7d2   : > { %3517 = vmatprep.subr.bf16.mxu1 %v3941_v27 }
 0x7d5   : > { %3518 = vmatpush3.bf16.msra.mxu1 %v3723_v48 }
 0x7d6   : > { %3519 = vmatprep.subr.bf16.mxu1 %v3941_v27 }
 0x7d9   : > { %3520 = vmatpush3.bf16.msra.mxu1 %v3724_v19 }
 0x7da   : > { %3521 = vmatprep.subr.bf16.mxu1 %v3941_v27  ;;  %v2886_v27 = vld [vmem:[%s4661_s5 + $0x6] ss:$0 sm:$0xff] }
 0x7dd   : > { %3522 = vmatpush3.bf16.msra.mxu1 %v3725_v20 }
 0x893   : > { %v2360_v51 = vpop.f32.mrb[128].mxu1 }
 0x894   : > { %v2361_v52 = vadd.f32 %v2866_v49, %v2360_v51  ;;  %v3485_v34 = vpop.f32.mrb[129].mxu1 }
 0x895   : > { %v2363_v53 = vpop.f32.mrb[130].mxu1 }
 0x896   : > { %v2364_v33 = vadd.f32 %v2866_v49, %v2363_v53  ;;  %v3486_v54 = vpop.f32.mrb[131].mxu1  ;;  %v2367_v25 = vmax.f32 %v2361_v52, 0.0 }
 0x898   : > { %v2368_v55 = vmax.f32 %v2364_v33, 0.0 }
 0x89a   : > { %v2369_v18 = vpack.c.bf16 %v2368_v55, %v2367_v25 }
 0x89c   : > { %3504 = vmatmul.mubr.bf16.vlgmr.msra.gmra.mrb[132].mxu0 %v2369_v18 }
 0x96f   : > { %v2477_v22 = vpop.f32.mrb[132].mxu0 }
 0x970   : > { %v2478_v23 = vadd.f32 %v2876_v21, %v2477_v22  ;;  %v3505_v29 = vpop.f32.mrb[133].mxu0 }
 0x971   : > { %v2480_v30 = vpop.f32.mrb[134].mxu0 }
 0x972   : > { %v2481_v17 = vadd.f32 %v2876_v21, %v2480_v30  ;;  %v3506_v43 = vpop.f32.mrb[135].mxu0  ;;  %v2484_v24 = vmax.f32 %v2478_v23, 0.0 }
 0x974   : > { %v2485_v46 = vmax.f32 %v2481_v17, 0.0 }
 0x976   : > { %v2486_v61 = vpack.c.bf16 %v2485_v46, %v2484_v24 }
 0x978   : > { %3524 = vmatmul.mubr.bf16.vlgmr.msra.gmra.mrb[132].mxu1 %v2486_v61 }
 0xa4b   : > { %v2594_v47 = vpop.f32.mrb[132].mxu1 }
 0xa4c   : > { %v2595_v56 = vadd.f32 %v2886_v27, %v2594_v47  ;;  %v3525_v57 = vpop.f32.mrb[133].mxu1 }
 0xa4d   : > { %v2597_v58 = vpop.f32.mrb[134].mxu1 }
 0xa4e   : > { %2601 = vst [vmem:[%s379_s19] sm:$0xff] %v2595_v56  ;;  %v2598_v59 = vadd.f32 %v2886_v27, %v2597_v58  ;;  %v3526_v62 = vpop.f32.mrb[135].mxu1 }
 0xa50   : > { %2602 = vst [vmem:[%s379_s19 + $0x8] sm:$0xff] %v2598_v59 }
 0xa51   : > { %3867 = shalt.err (!%p3864_p13)
}
 0xa52   : > { %s3868_s26 = scalar_lea.hbm %s4612_s7, 256  ;;  %s3872_s9 = scalar_lea.hbm %s4662_s6, 512 }
 0xa53   : > { %p3869_p2 = scmp.ne.s32.totalorder %s4612_s7, %s3868_s26  ;;  %p3873_p1 = scmp.lt.u32.totalorder %s4612_s7, %s4662_s6 }
 0xa54   : > { %p3874_p10 = scmp.lt.u32.totalorder %s3872_s9, %s3868_s26  ;;  %p3876_p9 = scmp.lt.u32.totalorder %s3868_s26, %s4612_s7 }
 0xa55   : > { %p3870_p8 = pnand %p3869_p2, %p4698_p12 }
 0xa56   : > { %p3875_p4 = por %p3874_p10, %p3873_p1 }
 0xa57   : > { %p3871_p0 = pneg %p3870_p8 }
 0xa58   : > { %p3877_p6 = por %p3876_p9, %p3875_p4 }
 0xa5a   : > { %p3878_p3 = pnand %p3877_p6, %p3871_p0 }
 0xa5c   : > { %3881 = shalt.err (!%p3878_p3)
}
 0xa5d   : > { %s3944_s20 = smov 128   ;;  %s3945_s11 = smov 8  }
 0xa5e   : > { %3537 = dma.vmem_to_hbm [thread:$0]  (%p4698_p12), %s4607_s29, 256, %s4612_s7, %s2604_s28, %s3944_s20, %s3944_s20, %s3945_s11  }
 0xa5f PF: > { %s4699_s27 = sld [smem:[#allocation15_spill]]  ;;  %s4700_s1 = sld [smem:[#allocation19_spill]] }
 0xa60   : > { %p4702_p7 = scmp.ge.s32.totalorder %s3928_s24, 2 }
 0xa65   : > { %s2632_s19 = sand.u32 1, %s4699_s27   ;;  %p4701_p5 = scmp.ne.s32.totalorder %s4700_s1, 0 }
 0xa66   : > { %s2633_s13 = scalar_lea.sflag [#allocation4], %s2632_s19 }
 0xa67   : > { %p3554_p11 = pnand %p4702_p7, %p4701_p5 }
 0xa69   : > { %3911 = dma.done.wait (!%p3554_p11), %s2633_s13, 256  }
 0xa6a   : > { %3913 = vsyncadd (!%p3554_p11), %s2633_s13, 4294967040  ;;  %s4703_s24 = sld [smem:[#allocation17_spill]]  ;;  %s4704_s25 = sld [smem:[#allocation16_spill]] }
 0xa6b   : > { %s4705_s23 = sld [smem:[#allocation18_spill]]  ;;  %s4706_s21 = smov %s3920_s22 }
 0xa70   : > { %p23_p13 = scmp.ge.s32.totalorder %s4703_s24, 4   ;;  %s4707_s22 = smov %s4704_s25 }
 0xa72   :  { %25 = sbr.rel (!%p23_p13) target bundleno = 10 (0xa), region = 132 }
 0xa79   :  { %2638 = vsyncpa [#allocation3], 1 }
 0xa7a   :  { %2640 = vsyncpa [#allocation3 + $0x1], 1 }
 0xa7b   :  { %2641 = vsyncpa [#allocation6], 1 }
 0xa7c   :  { %2643 = vsyncpa [#allocation6 + $0x1], 1 }
 0xa7d   :  { %2644 = vsyncpa [#allocation9], 1 }
 0xa7e   :  { %2645 = vsyncpa [#allocation4], 1 }
 0xa7f   :  { %2647 = vsyncpa [#allocation4 + $0x1], 1 }

</bundles_post_ra>
